<compile_context>
chip_gen: v7x
topology: tpu7x:2x2x1
jax: 0.10.0
libtpu: 0.0.40
codegen_flags: <defaults>
</compile_context>

<pallas_src>
import math
import functools

import jax
import jax.numpy as jnp
from jax.experimental import pallas as pl
from jax.experimental.pallas import tpu as pltpu


def fused_encoder_kernel(x_ref, bias_ref,
                         wqkv_ref, bqkv_ref, wo_ref, bo_ref,
                         g1_ref, b1_ref,
                         w1_ref, bf1_ref, w2_ref, bf2_ref,
                         o_ref, *, nhead, head_dim, bb, seq):
    """One grid step = one encoder layer applied to one batch block.

    Grid = (num_batch_blocks, num_layers); the layer axis is innermost and
    "arbitrary" so the activation stays resident in o_ref across layers.
    """
    l = pl.program_id(1)
    E = nhead * head_dim

    # Layer 0: seed the resident activation buffer from the input.
    @pl.when(l == 0)
    def _():
        o_ref[...] = x_ref[...]

    x = o_ref[...]                      # (bb*S, E) resident activation (VMEM)
    bias = bias_ref[...]                # (bb, S, S) additive mask bias (0 / -1e9)

    # ---- fused QKV projection: one (bb*S, E) @ (E, 3E) matmul ----
    qkv = jnp.dot(x, wqkv_ref[0], preferred_element_type=jnp.float32) + bqkv_ref[0]
    q = qkv[:, :E].reshape(bb, seq, E)          # leading-dim reshape (free)
    k = qkv[:, E:2 * E].reshape(bb, seq, E)
    v = qkv[:, 2 * E:].reshape(bb, seq, E)

    scale = 1.0 / math.sqrt(head_dim)           # matches cal_attntion (sqrt(head_dim))

    # ---- attention: static head loop, batched over the batch dim; the
    # concat-over-heads is folded into the output projection (sum of per-head
    # matmuls against W_o head slices) so no jnp.concatenate is needed. ----
    attn_proj = jnp.zeros((bb * seq, E), jnp.float32)
    for h in range(nhead):
        sl = slice(h * head_dim, (h + 1) * head_dim)
        qh = q[:, :, sl]                        # (bb, S, hd)
        kh = k[:, :, sl]
        vh = v[:, :, sl]
        sc = jnp.einsum('bqd,bkd->bqk', qh, kh,
                        preferred_element_type=jnp.float32) * scale + bias
        sc = sc - jnp.max(sc, axis=-1, keepdims=True)
        e = jnp.exp(sc)
        p = e * pl.reciprocal(jnp.sum(e, axis=-1, keepdims=True), approx=True)
        oh = jnp.einsum('bqk,bkd->bqd', p, vh,
                        preferred_element_type=jnp.float32)      # (bb, S, hd)
        attn_proj = attn_proj + jnp.dot(
            oh.reshape(bb * seq, head_dim), wo_ref[0, h],
            preferred_element_type=jnp.float32)
    attn_proj = attn_proj + bo_ref[0]

    g = g1_ref[0]
    be = b1_ref[0]

    def layernorm(y, eps=1e-5):
        mu = jnp.mean(y, axis=-1, keepdims=True)
        var = jnp.mean((y - mu) ** 2, axis=-1, keepdims=True)
        return (y - mu) * jax.lax.rsqrt(var + eps) * g + be

    # residual + norm1
    x1 = layernorm(x + attn_proj)

    # feed-forward: Linear -> ReLU -> Linear
    h1 = jnp.maximum(
        jnp.dot(x1, w1_ref[0], preferred_element_type=jnp.float32) + bf1_ref[0], 0.0)
    ff = jnp.dot(h1, w2_ref[0], preferred_element_type=jnp.float32) + bf2_ref[0]

    # residual + norm1 AGAIN (the reference module reuses norm1; norm2 is unused)
    o_ref[...] = layernorm(x1 + ff)


def encoder_forward(x, mask, layer_params, nhead, *, batch_block=None):
    """Fused Pallas forward for the whole encoder stack.

    x:    (B, S, E) float32
    mask: (B, S, S) float32, nonzero == masked (same semantics as
          `scores.masked_fill_(mask, -1e9)` after mask.unsqueeze(1)).
    """
    B, S, E = x.shape
    L = len(layer_params)
    Fd = layer_params[0]["w1"].shape[1]
    hd = E // nhead
    bb = B if batch_block is None else batch_block
    assert B % bb == 0
    nb = B // bb

    stack = lambda name: jnp.stack([p[name] for p in layer_params], axis=0)

    # Host-side packing (done once): merged QKV weights, per-head W_o slices.
    wqkv = jnp.concatenate([stack("wq"), stack("wk"), stack("wv")], axis=-1)  # (L,E,3E)
    bqkv = jnp.concatenate([stack("bq"), stack("bk"), stack("bv")], axis=-1)  # (L,1,3E)
    wo_h = stack("wo").reshape(L, nhead, hd, E)                               # (L,H,hd,E)
    bo = stack("bo")
    g1 = stack("g1")
    be1 = stack("be1")
    w1 = stack("w1")
    bf1 = stack("bf1")
    w2 = stack("w2")
    bf2 = stack("bf2")

    x2d = x.reshape(B * S, E).astype(jnp.float32)
    # Additive mask bias, computed once and shared by every layer/head.
    bias = jnp.where(mask != 0.0, -1e9, 0.0).astype(jnp.float32)              # (B,S,S)

    kernel = functools.partial(fused_encoder_kernel,
                               nhead=nhead, head_dim=hd, bb=bb, seq=S)

    # Advisory cost estimate for the XLA scheduler.
    flops = L * (2 * B * S * E * 3 * E         # QKV
                 + 4 * B * nhead * S * S * hd  # scores + attn@V
                 + 2 * B * S * E * E           # output proj
                 + 4 * B * S * E * Fd)         # FFN
    transcendentals = L * B * nhead * S * S
    weight_bytes = 4 * L * (E * 3 * E + 3 * E + E * E + E + 2 * E
                            + E * Fd + Fd + Fd * E + E)
    io_bytes = 4 * (2 * B * S * E + B * S * S)

    out2d = pl.pallas_call(
        kernel,
        out_shape=jax.ShapeDtypeStruct((B * S, E), jnp.float32),
        grid=(nb, L),
        in_specs=[
            pl.BlockSpec((bb * S, E), lambda ib, l: (ib, 0)),            # x
            pl.BlockSpec((bb, S, S), lambda ib, l: (ib, 0, 0)),          # mask bias
            pl.BlockSpec((1, E, 3 * E), lambda ib, l: (l, 0, 0)),        # wqkv
            pl.BlockSpec((1, 1, 3 * E), lambda ib, l: (l, 0, 0)),        # bqkv
            pl.BlockSpec((1, nhead, hd, E), lambda ib, l: (l, 0, 0, 0)), # wo (per-head)
            pl.BlockSpec((1, 1, E), lambda ib, l: (l, 0, 0)),            # bo
            pl.BlockSpec((1, 1, E), lambda ib, l: (l, 0, 0)),            # ln1 gamma
            pl.BlockSpec((1, 1, E), lambda ib, l: (l, 0, 0)),            # ln1 beta
            pl.BlockSpec((1, E, Fd), lambda ib, l: (l, 0, 0)),           # ff w1
            pl.BlockSpec((1, 1, Fd), lambda ib, l: (l, 0, 0)),           # ff b1
            pl.BlockSpec((1, Fd, E), lambda ib, l: (l, 0, 0)),           # ff w2
            pl.BlockSpec((1, 1, E), lambda ib, l: (l, 0, 0)),            # ff b2
        ],
        out_specs=pl.BlockSpec((bb * S, E), lambda ib, l: (ib, 0)),
        compiler_params=pltpu.CompilerParams(
            dimension_semantics=("parallel", "arbitrary")),
        cost_estimate=pl.CostEstimate(flops=flops,
                                      transcendentals=transcendentals,
                                      bytes_accessed=weight_bytes + io_bytes),
    )(x2d, bias, wqkv, bqkv, wo_h, bo, g1, be1, w1, bf1, w2, bf2)

    return out2d.reshape(B, S, E)


# ------------------------ pure-JAX reference (for checking) ------------------------
def _ref_layer(x, mask, p, nhead):
    B, S, E = x.shape
    hd = E // nhead
    q = x @ p["wq"] + p["bq"]
    k = x @ p["wk"] + p["bk"]
    v = x @ p["wv"] + p["bv"]

    def split(t):  # (B,S,E) -> (B,H,S,hd)
        return t.reshape(B, S, nhead, hd).transpose(0, 2, 1, 3)

    qh, kh, vh = split(q), split(k), split(v)
    sc = jnp.einsum("bhsd,bhtd->bhst", qh, kh) / math.sqrt(hd)
    sc = jnp.where(mask[:, None, :, :] != 0.0, -1e9, sc)
    attn = jax.nn.softmax(sc, axis=-1)
    o = jnp.einsum("bhst,bhtd->bhsd", attn, vh).transpose(0, 2, 1, 3).reshape(B, S, E)
    o = o @ p["wo"] + p["bo"]

    def ln(y, g, b, eps=1e-5):
        mu = y.mean(-1, keepdims=True)
        var = ((y - mu) ** 2).mean(-1, keepdims=True)
        return (y - mu) / jnp.sqrt(var + eps) * g + b

    x1 = ln(x + o, p["g1"], p["be1"])
    ff = jnp.maximum(x1 @ p["w1"] + p["bf1"], 0.0) @ p["w2"] + p["bf2"]
    return ln(x1 + ff, p["g1"], p["be1"])


def _ref_encoder(x, mask, layer_params, nhead):
    out = x
    for p in layer_params:
        out = _ref_layer(out, mask, p, nhead)
    return out


# ------------------------ deterministic parameter init ------------------------
def init_layer_params(key, embed_dim, ff_dim):
    ks = jax.random.split(key, 12)
    bound_e = 1.0 / math.sqrt(embed_dim)
    bound_f = 1.0 / math.sqrt(ff_dim)
    u = lambda kk, shape, b: jax.random.uniform(kk, shape, jnp.float32, -b, b)
    return {
        "wq": u(ks[0], (embed_dim, embed_dim), bound_e), "bq": u(ks[1], (1, embed_dim), bound_e),
        "wk": u(ks[2], (embed_dim, embed_dim), bound_e), "bk": u(ks[3], (1, embed_dim), bound_e),
        "wv": u(ks[4], (embed_dim, embed_dim), bound_e), "bv": u(ks[5], (1, embed_dim), bound_e),
        "wo": u(ks[6], (embed_dim, embed_dim), bound_e), "bo": u(ks[7], (1, embed_dim), bound_e),
        "g1": jnp.ones((1, embed_dim), jnp.float32),
        "be1": jnp.zeros((1, embed_dim), jnp.float32),
        "w1": u(ks[8], (embed_dim, ff_dim), bound_e), "bf1": u(ks[9], (1, ff_dim), bound_e),
        "w2": u(ks[10], (ff_dim, embed_dim), bound_f), "bf2": u(ks[11], (1, embed_dim), bound_f),
    }


if __name__ == "__main__":
    num_layers = 2
    B, S, E, H, FF = 2, 8, 32, 4, 64

    key = jax.random.PRNGKey(0)
    k_x, k_params = jax.random.split(key)

    x = jax.random.normal(k_x, (B, S, E), dtype=jnp.float32)

    # key-padding style mask: sequence 0 uses all 8 tokens, sequence 1 only 6.
    lengths = jnp.array([8, 6])
    key_pad = (jnp.arange(S)[None, :] >= lengths[:, None])                    # (B,S) True = pad
    mask = jnp.broadcast_to(key_pad[:, None, :], (B, S, S)).astype(jnp.float32)

    layer_keys = jax.random.split(k_params, num_layers)
    layer_params = [init_layer_params(k, E, FF) for k in layer_keys]

    out = encoder_forward(x, mask, layer_params, H)
    out = jax.block_until_ready(out)

    ref = _ref_encoder(x, mask, layer_params, H)
    assert out.shape == (B, S, E)
    assert jnp.allclose(out, ref, atol=1e-3, rtol=1e-3), (
        "mismatch vs JAX reference: max abs diff "
        f"{float(jnp.max(jnp.abs(out - ref)))}")

    print("KERNEL_OK")
</pallas_src>

<mosaic_0001>
module attributes {stable_mosaic.version = 11 : i64} {
  func.func @fused_encoder_kernel(%arg0: i32, %arg1: i32, %arg2: memref<16x32xf32, #tpu.memory_space<vmem>>, %arg3: memref<2x8x8xf32, #tpu.memory_space<vmem>>, %arg4: memref<1x32x96xf32, #tpu.memory_space<vmem>>, %arg5: memref<1x1x96xf32, #tpu.memory_space<vmem>>, %arg6: memref<1x4x8x32xf32, #tpu.memory_space<vmem>>, %arg7: memref<1x1x32xf32, #tpu.memory_space<vmem>>, %arg8: memref<1x1x32xf32, #tpu.memory_space<vmem>>, %arg9: memref<1x1x32xf32, #tpu.memory_space<vmem>>, %arg10: memref<1x32x64xf32, #tpu.memory_space<vmem>>, %arg11: memref<1x1x64xf32, #tpu.memory_space<vmem>>, %arg12: memref<1x64x32xf32, #tpu.memory_space<vmem>>, %arg13: memref<1x1x32xf32, #tpu.memory_space<vmem>>, %arg14: memref<16x32xf32, #tpu.memory_space<vmem>>) attributes {dimension_semantics = [#tpu.dimension_semantics<parallel>, #tpu.dimension_semantics<arbitrary>], iteration_bounds = array<i64: 1, 2>, scalar_prefetch = 0 : i64, scratch_operands = 0 : i64, tpu.core_type = #tpu.core_type<tc>, window_params = [{transform_indices = @transform_0, window_bounds = array<i64: 16, 32>}, {transform_indices = @transform_1, window_bounds = array<i64: 2, 8, 8>}, {transform_indices = @transform_2, window_bounds = array<i64: 1, 32, 96>}, {transform_indices = @transform_3, window_bounds = array<i64: 1, 1, 96>}, {transform_indices = @transform_4, window_bounds = array<i64: 1, 4, 8, 32>}, {transform_indices = @transform_5, window_bounds = array<i64: 1, 1, 32>}, {transform_indices = @transform_6, window_bounds = array<i64: 1, 1, 32>}, {transform_indices = @transform_7, window_bounds = array<i64: 1, 1, 32>}, {transform_indices = @transform_8, window_bounds = array<i64: 1, 32, 64>}, {transform_indices = @transform_9, window_bounds = array<i64: 1, 1, 64>}, {transform_indices = @transform_10, window_bounds = array<i64: 1, 64, 32>}, {transform_indices = @transform_11, window_bounds = array<i64: 1, 1, 32>}, {transform_indices = @transform_12, window_bounds = array<i64: 16, 32>}]} {
    %c0_i32 = arith.constant 0 : i32
    %0 = arith.cmpi eq, %arg1, %c0_i32 : i32
    %1 = arith.extui %0 : i1 to i32
    %c0_i32_0 = arith.constant 0 : i32
    %2 = arith.cmpi ne, %1, %c0_i32_0 : i32
    scf.if %2 {
      %c0_85 = arith.constant 0 : index
      %c0_86 = arith.constant 0 : index
      %182 = vector.load %arg2[%c0_85, %c0_86] : memref<16x32xf32, #tpu.memory_space<vmem>>, vector<16x32xf32>
      %c0_87 = arith.constant 0 : index
      %c0_88 = arith.constant 0 : index
      %183 = vector.load %arg14[%c0_87, %c0_88] : memref<16x32xf32, #tpu.memory_space<vmem>>, vector<16x32xf32>
      tpu.vector_store %arg14[%c0_87, %c0_88], %182 {strides = array<i32>} : memref<16x32xf32, #tpu.memory_space<vmem>>, vector<16x32xf32>,
    } else {
    }
    %c0 = arith.constant 0 : index
    %c0_1 = arith.constant 0 : index
    %3 = vector.load %arg14[%c0, %c0_1] : memref<16x32xf32, #tpu.memory_space<vmem>>, vector<16x32xf32>
    %c0_2 = arith.constant 0 : index
    %c0_3 = arith.constant 0 : index
    %c0_4 = arith.constant 0 : index
    %4 = vector.load %arg3[%c0_2, %c0_3, %c0_4] : memref<2x8x8xf32, #tpu.memory_space<vmem>>, vector<2x8x8xf32>
    %c0_5 = arith.constant 0 : index
    %c0_6 = arith.constant 0 : index
    %c0_7 = arith.constant 0 : index
    %5 = vector.load %arg4[%c0_5, %c0_6, %c0_7] : memref<1x32x96xf32, #tpu.memory_space<vmem>>, vector<1x32x96xf32>
    %6 = vector.shape_cast %5 : vector<1x32x96xf32> to vector<32x96xf32>
    %cst = arith.constant dense<0.000000e+00> : vector<16x96xf32>
    %7 = tpu.matmul %3, %6, %cst {dimension_numbers = #tpu.dot_dimension_numbers<[1], [0], [0], [1], [0, 0, 1, 1], [], []>} : vector<16x32xf32>, vector<32x96xf32>, vector<16x96xf32> -> vector<16x96xf32>
    %c0_8 = arith.constant 0 : index
    %c0_9 = arith.constant 0 : index
    %c0_10 = arith.constant 0 : index
    %8 = vector.load %arg5[%c0_8, %c0_9, %c0_10] : memref<1x1x96xf32, #tpu.memory_space<vmem>>, vector<1x1x96xf32>
    %9 = vector.shape_cast %8 : vector<1x1x96xf32> to vector<1x96xf32>
    %10 = vector.broadcast %9 : vector<1x96xf32> to vector<16x96xf32>
    %11 = arith.addf %7, %10 : vector<16x96xf32>
    %12 = vector.extract_strided_slice %11 {offsets = [0, 0], sizes = [16, 32], strides = [1, 1]} : vector<16x96xf32> to vector<16x32xf32>
    %13 = vector.shape_cast %12 : vector<16x32xf32> to vector<2x8x32xf32>
    %14 = vector.extract_strided_slice %11 {offsets = [0, 32], sizes = [16, 32], strides = [1, 1]} : vector<16x96xf32> to vector<16x32xf32>
    %15 = vector.shape_cast %14 : vector<16x32xf32> to vector<2x8x32xf32>
    %16 = vector.extract_strided_slice %11 {offsets = [0, 64], sizes = [16, 32], strides = [1, 1]} : vector<16x96xf32> to vector<16x32xf32>
    %17 = vector.shape_cast %16 : vector<16x32xf32> to vector<2x8x32xf32>
    %cst_11 = arith.constant 0.000000e+00 : f32
    %18 = vector.broadcast %cst_11 : f32 to vector<16x32xf32>
    %19 = vector.extract_strided_slice %13 {offsets = [0, 0, 0], sizes = [2, 8, 8], strides = [1, 1, 1]} : vector<2x8x32xf32> to vector<2x8x8xf32>
    %20 = vector.extract_strided_slice %15 {offsets = [0, 0, 0], sizes = [2, 8, 8], strides = [1, 1, 1]} : vector<2x8x32xf32> to vector<2x8x8xf32>
    %21 = vector.extract_strided_slice %17 {offsets = [0, 0, 0], sizes = [2, 8, 8], strides = [1, 1, 1]} : vector<2x8x32xf32> to vector<2x8x8xf32>
    "tpu.trace_start"() <{level = 10 : i32, message = "bqd,bkd->bqk"}> : () -> ()
    %cst_12 = arith.constant dense<0.000000e+00> : vector<2x8x8xf32>
    %22 = tpu.matmul %19, %20, %cst_12 {dimension_numbers = #tpu.dot_dimension_numbers<[2], [2], [1], [1], [0, 0, 0, 1, 1, 1], [0], [0]>} : vector<2x8x8xf32>, vector<2x8x8xf32>, vector<2x8x8xf32> -> vector<2x8x8xf32>
    "tpu.trace_stop"() : () -> ()
    %cst_13 = arith.constant 0.353553385 : f32
    %23 = vector.broadcast %cst_13 : f32 to vector<2x8x8xf32>
    %24 = arith.mulf %22, %23 : vector<2x8x8xf32>
    %25 = arith.addf %24, %4 : vector<2x8x8xf32>
    %cst_14 = arith.constant dense<0xFF800000> : vector<2x8xf32>
    %26 = vector.multi_reduction <maximumf>, %25, %cst_14 [2] : vector<2x8x8xf32> to vector<2x8xf32>
    %27 = vector.shape_cast %26 : vector<2x8xf32> to vector<2x8x1xf32>
    %28 = vector.broadcast %27 : vector<2x8x1xf32> to vector<2x8x8xf32>
    %29 = arith.subf %25, %28 : vector<2x8x8xf32>
    %30 = math.exp %29 : vector<2x8x8xf32>
    %cst_15 = arith.constant dense<0.000000e+00> : vector<2x8xf32>
    %31 = vector.multi_reduction <add>, %30, %cst_15 [2] : vector<2x8x8xf32> to vector<2x8xf32>
    %32 = vector.shape_cast %31 : vector<2x8xf32> to vector<2x8x1xf32>
    %33 = tpu.reciprocal %32 {approx = true} : vector<2x8x1xf32> -> vector<2x8x1xf32>
    %34 = vector.broadcast %33 : vector<2x8x1xf32> to vector<2x8x8xf32>
    %35 = arith.mulf %30, %34 : vector<2x8x8xf32>
    "tpu.trace_start"() <{level = 10 : i32, message = "bqk,bkd->bqd"}> : () -> ()
    %cst_16 = arith.constant dense<0.000000e+00> : vector<2x8x8xf32>
    %36 = tpu.matmul %35, %21, %cst_16 {dimension_numbers = #tpu.dot_dimension_numbers<[2], [1], [1], [2], [0, 0, 0, 1, 1, 2], [0], [0]>} : vector<2x8x8xf32>, vector<2x8x8xf32>, vector<2x8x8xf32> -> vector<2x8x8xf32>
    "tpu.trace_stop"() : () -> ()
    %37 = vector.shape_cast %36 : vector<2x8x8xf32> to vector<16x8xf32>
    %c0_17 = arith.constant 0 : index
    %c0_18 = arith.constant 0 : index
    %c0_19 = arith.constant 0 : index
    %c0_20 = arith.constant 0 : index
    %38 = vector.load %arg6[%c0_17, %c0_18, %c0_19, %c0_20] : memref<1x4x8x32xf32, #tpu.memory_space<vmem>>, vector<1x1x8x32xf32>
    %39 = vector.shape_cast %38 : vector<1x1x8x32xf32> to vector<8x32xf32>
    %cst_21 = arith.constant dense<0.000000e+00> : vector<16x32xf32>
    %40 = tpu.matmul %37, %39, %cst_21 {dimension_numbers = #tpu.dot_dimension_numbers<[1], [0], [0], [1], [0, 0, 1, 1], [], []>} : vector<16x8xf32>, vector<8x32xf32>, vector<16x32xf32> -> vector<16x32xf32>
    %41 = arith.addf %18, %40 : vector<16x32xf32>
    %42 = vector.extract_strided_slice %13 {offsets = [0, 0, 8], sizes = [2, 8, 8], strides = [1, 1, 1]} : vector<2x8x32xf32> to vector<2x8x8xf32>
    %43 = vector.extract_strided_slice %15 {offsets = [0, 0, 8], sizes = [2, 8, 8], strides = [1, 1, 1]} : vector<2x8x32xf32> to vector<2x8x8xf32>
    %44 = vector.extract_strided_slice %17 {offsets = [0, 0, 8], sizes = [2, 8, 8], strides = [1, 1, 1]} : vector<2x8x32xf32> to vector<2x8x8xf32>
    "tpu.trace_start"() <{level = 10 : i32, message = "bqd,bkd->bqk"}> : () -> ()
    %cst_22 = arith.constant dense<0.000000e+00> : vector<2x8x8xf32>
    %45 = tpu.matmul %42, %43, %cst_22 {dimension_numbers = #tpu.dot_dimension_numbers<[2], [2], [1], [1], [0, 0, 0, 1, 1, 1], [0], [0]>} : vector<2x8x8xf32>, vector<2x8x8xf32>, vector<2x8x8xf32> -> vector<2x8x8xf32>
    "tpu.trace_stop"() : () -> ()
    %cst_23 = arith.constant 0.353553385 : f32
    %46 = vector.broadcast %cst_23 : f32 to vector<2x8x8xf32>
    %47 = arith.mulf %45, %46 : vector<2x8x8xf32>
    %48 = arith.addf %47, %4 : vector<2x8x8xf32>
    %cst_24 = arith.constant dense<0xFF800000> : vector<2x8xf32>
    %49 = vector.multi_reduction <maximumf>, %48, %cst_24 [2] : vector<2x8x8xf32> to vector<2x8xf32>
    %50 = vector.shape_cast %49 : vector<2x8xf32> to vector<2x8x1xf32>
    %51 = vector.broadcast %50 : vector<2x8x1xf32> to vector<2x8x8xf32>
    %52 = arith.subf %48, %51 : vector<2x8x8xf32>
    %53 = math.exp %52 : vector<2x8x8xf32>
    %cst_25 = arith.constant dense<0.000000e+00> : vector<2x8xf32>
    %54 = vector.multi_reduction <add>, %53, %cst_25 [2] : vector<2x8x8xf32> to vector<2x8xf32>
    %55 = vector.shape_cast %54 : vector<2x8xf32> to vector<2x8x1xf32>
    %56 = tpu.reciprocal %55 {approx = true} : vector<2x8x1xf32> -> vector<2x8x1xf32>
    %57 = vector.broadcast %56 : vector<2x8x1xf32> to vector<2x8x8xf32>
    %58 = arith.mulf %53, %57 : vector<2x8x8xf32>
    "tpu.trace_start"() <{level = 10 : i32, message = "bqk,bkd->bqd"}> : () -> ()
    %cst_26 = arith.constant dense<0.000000e+00> : vector<2x8x8xf32>
    %59 = tpu.matmul %58, %44, %cst_26 {dimension_numbers = #tpu.dot_dimension_numbers<[2], [1], [1], [2], [0, 0, 0, 1, 1, 2], [0], [0]>} : vector<2x8x8xf32>, vector<2x8x8xf32>, vector<2x8x8xf32> -> vector<2x8x8xf32>
    "tpu.trace_stop"() : () -> ()
    %60 = vector.shape_cast %59 : vector<2x8x8xf32> to vector<16x8xf32>
    %c0_27 = arith.constant 0 : index
    %c1 = arith.constant 1 : index
    %c0_28 = arith.constant 0 : index
    %c0_29 = arith.constant 0 : index
    %61 = vector.load %arg6[%c0_27, %c1, %c0_28, %c0_29] : memref<1x4x8x32xf32, #tpu.memory_space<vmem>>, vector<1x1x8x32xf32>
    %62 = vector.shape_cast %61 : vector<1x1x8x32xf32> to vector<8x32xf32>
    %cst_30 = arith.constant dense<0.000000e+00> : vector<16x32xf32>
    %63 = tpu.matmul %60, %62, %cst_30 {dimension_numbers = #tpu.dot_dimension_numbers<[1], [0], [0], [1], [0, 0, 1, 1], [], []>} : vector<16x8xf32>, vector<8x32xf32>, vector<16x32xf32> -> vector<16x32xf32>
    %64 = arith.addf %41, %63 : vector<16x32xf32>
    %65 = vector.extract_strided_slice %13 {offsets = [0, 0, 16], sizes = [2, 8, 8], strides = [1, 1, 1]} : vector<2x8x32xf32> to vector<2x8x8xf32>
    %66 = vector.extract_strided_slice %15 {offsets = [0, 0, 16], sizes = [2, 8, 8], strides = [1, 1, 1]} : vector<2x8x32xf32> to vector<2x8x8xf32>
    %67 = vector.extract_strided_slice %17 {offsets = [0, 0, 16], sizes = [2, 8, 8], strides = [1, 1, 1]} : vector<2x8x32xf32> to vector<2x8x8xf32>
    "tpu.trace_start"() <{level = 10 : i32, message = "bqd,bkd->bqk"}> : () -> ()
    %cst_31 = arith.constant dense<0.000000e+00> : vector<2x8x8xf32>
    %68 = tpu.matmul %65, %66, %cst_31 {dimension_numbers = #tpu.dot_dimension_numbers<[2], [2], [1], [1], [0, 0, 0, 1, 1, 1], [0], [0]>} : vector<2x8x8xf32>, vector<2x8x8xf32>, vector<2x8x8xf32> -> vector<2x8x8xf32>
    "tpu.trace_stop"() : () -> ()
    %cst_32 = arith.constant 0.353553385 : f32
    %69 = vector.broadcast %cst_32 : f32 to vector<2x8x8xf32>
    %70 = arith.mulf %68, %69 : vector<2x8x8xf32>
    %71 = arith.addf %70, %4 : vector<2x8x8xf32>
    %cst_33 = arith.constant dense<0xFF800000> : vector<2x8xf32>
    %72 = vector.multi_reduction <maximumf>, %71, %cst_33 [2] : vector<2x8x8xf32> to vector<2x8xf32>
    %73 = vector.shape_cast %72 : vector<2x8xf32> to vector<2x8x1xf32>
    %74 = vector.broadcast %73 : vector<2x8x1xf32> to vector<2x8x8xf32>
    %75 = arith.subf %71, %74 : vector<2x8x8xf32>
    %76 = math.exp %75 : vector<2x8x8xf32>
    %cst_34 = arith.constant dense<0.000000e+00> : vector<2x8xf32>
    %77 = vector.multi_reduction <add>, %76, %cst_34 [2] : vector<2x8x8xf32> to vector<2x8xf32>
    %78 = vector.shape_cast %77 : vector<2x8xf32> to vector<2x8x1xf32>
    %79 = tpu.reciprocal %78 {approx = true} : vector<2x8x1xf32> -> vector<2x8x1xf32>
    %80 = vector.broadcast %79 : vector<2x8x1xf32> to vector<2x8x8xf32>
    %81 = arith.mulf %76, %80 : vector<2x8x8xf32>
    "tpu.trace_start"() <{level = 10 : i32, message = "bqk,bkd->bqd"}> : () -> ()
    %cst_35 = arith.constant dense<0.000000e+00> : vector<2x8x8xf32>
    %82 = tpu.matmul %81, %67, %cst_35 {dimension_numbers = #tpu.dot_dimension_numbers<[2], [1], [1], [2], [0, 0, 0, 1, 1, 2], [0], [0]>} : vector<2x8x8xf32>, vector<2x8x8xf32>, vector<2x8x8xf32> -> vector<2x8x8xf32>
    "tpu.trace_stop"() : () -> ()
    %83 = vector.shape_cast %82 : vector<2x8x8xf32> to vector<16x8xf32>
    %c0_36 = arith.constant 0 : index
    %c2 = arith.constant 2 : index
    %c0_37 = arith.constant 0 : index
    %c0_38 = arith.constant 0 : index
    %84 = vector.load %arg6[%c0_36, %c2, %c0_37, %c0_38] : memref<1x4x8x32xf32, #tpu.memory_space<vmem>>, vector<1x1x8x32xf32>
    %85 = vector.shape_cast %84 : vector<1x1x8x32xf32> to vector<8x32xf32>
    %cst_39 = arith.constant dense<0.000000e+00> : vector<16x32xf32>
    %86 = tpu.matmul %83, %85, %cst_39 {dimension_numbers = #tpu.dot_dimension_numbers<[1], [0], [0], [1], [0, 0, 1, 1], [], []>} : vector<16x8xf32>, vector<8x32xf32>, vector<16x32xf32> -> vector<16x32xf32>
    %87 = arith.addf %64, %86 : vector<16x32xf32>
    %88 = vector.extract_strided_slice %13 {offsets = [0, 0, 24], sizes = [2, 8, 8], strides = [1, 1, 1]} : vector<2x8x32xf32> to vector<2x8x8xf32>
    %89 = vector.extract_strided_slice %15 {offsets = [0, 0, 24], sizes = [2, 8, 8], strides = [1, 1, 1]} : vector<2x8x32xf32> to vector<2x8x8xf32>
    %90 = vector.extract_strided_slice %17 {offsets = [0, 0, 24], sizes = [2, 8, 8], strides = [1, 1, 1]} : vector<2x8x32xf32> to vector<2x8x8xf32>
    "tpu.trace_start"() <{level = 10 : i32, message = "bqd,bkd->bqk"}> : () -> ()
    %cst_40 = arith.constant dense<0.000000e+00> : vector<2x8x8xf32>
    %91 = tpu.matmul %88, %89, %cst_40 {dimension_numbers = #tpu.dot_dimension_numbers<[2], [2], [1], [1], [0, 0, 0, 1, 1, 1], [0], [0]>} : vector<2x8x8xf32>, vector<2x8x8xf32>, vector<2x8x8xf32> -> vector<2x8x8xf32>
    "tpu.trace_stop"() : () -> ()
    %cst_41 = arith.constant 0.353553385 : f32
    %92 = vector.broadcast %cst_41 : f32 to vector<2x8x8xf32>
    %93 = arith.mulf %91, %92 : vector<2x8x8xf32>
    %94 = arith.addf %93, %4 : vector<2x8x8xf32>
    %cst_42 = arith.constant dense<0xFF800000> : vector<2x8xf32>
    %95 = vector.multi_reduction <maximumf>, %94, %cst_42 [2] : vector<2x8x8xf32> to vector<2x8xf32>
    %96 = vector.shape_cast %95 : vector<2x8xf32> to vector<2x8x1xf32>
    %97 = vector.broadcast %96 : vector<2x8x1xf32> to vector<2x8x8xf32>
    %98 = arith.subf %94, %97 : vector<2x8x8xf32>
    %99 = math.exp %98 : vector<2x8x8xf32>
    %cst_43 = arith.constant dense<0.000000e+00> : vector<2x8xf32>
    %100 = vector.multi_reduction <add>, %99, %cst_43 [2] : vector<2x8x8xf32> to vector<2x8xf32>
    %101 = vector.shape_cast %100 : vector<2x8xf32> to vector<2x8x1xf32>
    %102 = tpu.reciprocal %101 {approx = true} : vector<2x8x1xf32> -> vector<2x8x1xf32>
    %103 = vector.broadcast %102 : vector<2x8x1xf32> to vector<2x8x8xf32>
    %104 = arith.mulf %99, %103 : vector<2x8x8xf32>
    "tpu.trace_start"() <{level = 10 : i32, message = "bqk,bkd->bqd"}> : () -> ()
    %cst_44 = arith.constant dense<0.000000e+00> : vector<2x8x8xf32>
    %105 = tpu.matmul %104, %90, %cst_44 {dimension_numbers = #tpu.dot_dimension_numbers<[2], [1], [1], [2], [0, 0, 0, 1, 1, 2], [0], [0]>} : vector<2x8x8xf32>, vector<2x8x8xf32>, vector<2x8x8xf32> -> vector<2x8x8xf32>
    "tpu.trace_stop"() : () -> ()
    %106 = vector.shape_cast %105 : vector<2x8x8xf32> to vector<16x8xf32>
    %c0_45 = arith.constant 0 : index
    %c3 = arith.constant 3 : index
    %c0_46 = arith.constant 0 : index
    %c0_47 = arith.constant 0 : index
    %107 = vector.load %arg6[%c0_45, %c3, %c0_46, %c0_47] : memref<1x4x8x32xf32, #tpu.memory_space<vmem>>, vector<1x1x8x32xf32>
    %108 = vector.shape_cast %107 : vector<1x1x8x32xf32> to vector<8x32xf32>
    %cst_48 = arith.constant dense<0.000000e+00> : vector<16x32xf32>
    %109 = tpu.matmul %106, %108, %cst_48 {dimension_numbers = #tpu.dot_dimension_numbers<[1], [0], [0], [1], [0, 0, 1, 1], [], []>} : vector<16x8xf32>, vector<8x32xf32>, vector<16x32xf32> -> vector<16x32xf32>
    %110 = arith.addf %87, %109 : vector<16x32xf32>
    %c0_49 = arith.constant 0 : index
    %c0_50 = arith.constant 0 : index
    %c0_51 = arith.constant 0 : index
    %111 = vector.load %arg7[%c0_49, %c0_50, %c0_51] : memref<1x1x32xf32, #tpu.memory_space<vmem>>, vector<1x1x32xf32>
    %112 = vector.shape_cast %111 : vector<1x1x32xf32> to vector<1x32xf32>
    %113 = vector.broadcast %112 : vector<1x32xf32> to vector<16x32xf32>
    %114 = arith.addf %110, %113 : vector<16x32xf32>
    %c0_52 = arith.constant 0 : index
    %c0_53 = arith.constant 0 : index
    %c0_54 = arith.constant 0 : index
    %115 = vector.load %arg8[%c0_52, %c0_53, %c0_54] : memref<1x1x32xf32, #tpu.memory_space<vmem>>, vector<1x1x32xf32>
    %116 = vector.shape_cast %115 : vector<1x1x32xf32> to vector<1x32xf32>
    %c0_55 = arith.constant 0 : index
    %c0_56 = arith.constant 0 : index
    %c0_57 = arith.constant 0 : index
    %117 = vector.load %arg9[%c0_55, %c0_56, %c0_57] : memref<1x1x32xf32, #tpu.memory_space<vmem>>, vector<1x1x32xf32>
    %118 = vector.shape_cast %117 : vector<1x1x32xf32> to vector<1x32xf32>
    %119 = arith.addf %3, %114 : vector<16x32xf32>
    %cst_58 = arith.constant dense<0.000000e+00> : vector<16xf32>
    %120 = vector.multi_reduction <add>, %119, %cst_58 [1] : vector<16x32xf32> to vector<16xf32>
    %121 = vector.shape_cast %120 : vector<16xf32> to vector<16x1xf32>
    %cst_59 = arith.constant 3.200000e+01 : f32
    %122 = vector.broadcast %cst_59 : f32 to vector<16x1xf32>
    %123 = arith.divf %121, %122 : vector<16x1xf32>
    %124 = vector.broadcast %123 : vector<16x1xf32> to vector<16x32xf32>
    %125 = arith.subf %119, %124 : vector<16x32xf32>
    %126 = arith.mulf %125, %125 : vector<16x32xf32>
    %cst_60 = arith.constant dense<0.000000e+00> : vector<16xf32>
    %127 = vector.multi_reduction <add>, %126, %cst_60 [1] : vector<16x32xf32> to vector<16xf32>
    %128 = vector.shape_cast %127 : vector<16xf32> to vector<16x1xf32>
    %cst_61 = arith.constant 3.200000e+01 : f32
    %129 = vector.broadcast %cst_61 : f32 to vector<16x1xf32>
    %130 = arith.divf %128, %129 : vector<16x1xf32>
    %131 = vector.broadcast %123 : vector<16x1xf32> to vector<16x32xf32>
    %132 = arith.subf %119, %131 : vector<16x32xf32>
    %cst_62 = arith.constant 9.99999974E-6 : f32
    %133 = vector.broadcast %cst_62 : f32 to vector<16x1xf32>
    %134 = arith.addf %130, %133 : vector<16x1xf32>
    %135 = math.rsqrt %134 : vector<16x1xf32>
    %136 = vector.broadcast %135 : vector<16x1xf32> to vector<16x32xf32>
    %137 = arith.mulf %132, %136 : vector<16x32xf32>
    %138 = vector.broadcast %116 : vector<1x32xf32> to vector<16x32xf32>
    %139 = arith.mulf %137, %138 : vector<16x32xf32>
    %140 = vector.broadcast %118 : vector<1x32xf32> to vector<16x32xf32>
    %141 = arith.addf %139, %140 : vector<16x32xf32>
    %c0_63 = arith.constant 0 : index
    %c0_64 = arith.constant 0 : index
    %c0_65 = arith.constant 0 : index
    %142 = vector.load %arg10[%c0_63, %c0_64, %c0_65] : memref<1x32x64xf32, #tpu.memory_space<vmem>>, vector<1x32x64xf32>
    %143 = vector.shape_cast %142 : vector<1x32x64xf32> to vector<32x64xf32>
    %cst_66 = arith.constant dense<0.000000e+00> : vector<16x64xf32>
    %144 = tpu.matmul %141, %143, %cst_66 {dimension_numbers = #tpu.dot_dimension_numbers<[1], [0], [0], [1], [0, 0, 1, 1], [], []>} : vector<16x32xf32>, vector<32x64xf32>, vector<16x64xf32> -> vector<16x64xf32>
    %c0_67 = arith.constant 0 : index
    %c0_68 = arith.constant 0 : index
    %c0_69 = arith.constant 0 : index
    %145 = vector.load %arg11[%c0_67, %c0_68, %c0_69] : memref<1x1x64xf32, #tpu.memory_space<vmem>>, vector<1x1x64xf32>
    %146 = vector.shape_cast %145 : vector<1x1x64xf32> to vector<1x64xf32>
    %147 = vector.broadcast %146 : vector<1x64xf32> to vector<16x64xf32>
    %148 = arith.addf %144, %147 : vector<16x64xf32>
    %cst_70 = arith.constant 0.000000e+00 : f32
    %149 = vector.broadcast %cst_70 : f32 to vector<16x64xf32>
    %150 = arith.maximumf %148, %149 : vector<16x64xf32>
    %c0_71 = arith.constant 0 : index
    %c0_72 = arith.constant 0 : index
    %c0_73 = arith.constant 0 : index
    %151 = vector.load %arg12[%c0_71, %c0_72, %c0_73] : memref<1x64x32xf32, #tpu.memory_space<vmem>>, vector<1x64x32xf32>
    %152 = vector.shape_cast %151 : vector<1x64x32xf32> to vector<64x32xf32>
    %cst_74 = arith.constant dense<0.000000e+00> : vector<16x32xf32>
    %153 = tpu.matmul %150, %152, %cst_74 {dimension_numbers = #tpu.dot_dimension_numbers<[1], [0], [0], [1], [0, 0, 1, 1], [], []>} : vector<16x64xf32>, vector<64x32xf32>, vector<16x32xf32> -> vector<16x32xf32>
    %c0_75 = arith.constant 0 : index
    %c0_76 = arith.constant 0 : index
    %c0_77 = arith.constant 0 : index
    %154 = vector.load %arg13[%c0_75, %c0_76, %c0_77] : memref<1x1x32xf32, #tpu.memory_space<vmem>>, vector<1x1x32xf32>
    %155 = vector.shape_cast %154 : vector<1x1x32xf32> to vector<1x32xf32>
    %156 = vector.broadcast %155 : vector<1x32xf32> to vector<16x32xf32>
    %157 = arith.addf %153, %156 : vector<16x32xf32>
    %158 = arith.addf %141, %157 : vector<16x32xf32>
    %cst_78 = arith.constant dense<0.000000e+00> : vector<16xf32>
    %159 = vector.multi_reduction <add>, %158, %cst_78 [1] : vector<16x32xf32> to vector<16xf32>
    %160 = vector.shape_cast %159 : vector<16xf32> to vector<16x1xf32>
    %cst_79 = arith.constant 3.200000e+01 : f32
    %161 = vector.broadcast %cst_79 : f32 to vector<16x1xf32>
    %162 = arith.divf %160, %161 : vector<16x1xf32>
    %163 = vector.broadcast %162 : vector<16x1xf32> to vector<16x32xf32>
    %164 = arith.subf %158, %163 : vector<16x32xf32>
    %165 = arith.mulf %164, %164 : vector<16x32xf32>
    %cst_80 = arith.constant dense<0.000000e+00> : vector<16xf32>
    %166 = vector.multi_reduction <add>, %165, %cst_80 [1] : vector<16x32xf32> to vector<16xf32>
    %167 = vector.shape_cast %166 : vector<16xf32> to vector<16x1xf32>
    %cst_81 = arith.constant 3.200000e+01 : f32
    %168 = vector.broadcast %cst_81 : f32 to vector<16x1xf32>
    %169 = arith.divf %167, %168 : vector<16x1xf32>
    %170 = vector.broadcast %162 : vector<16x1xf32> to vector<16x32xf32>
    %171 = arith.subf %158, %170 : vector<16x32xf32>
    %cst_82 = arith.constant 9.99999974E-6 : f32
    %172 = vector.broadcast %cst_82 : f32 to vector<16x1xf32>
    %173 = arith.addf %169, %172 : vector<16x1xf32>
    %174 = math.rsqrt %173 : vector<16x1xf32>
    %175 = vector.broadcast %174 : vector<16x1xf32> to vector<16x32xf32>
    %176 = arith.mulf %171, %175 : vector<16x32xf32>
    %177 = vector.broadcast %116 : vector<1x32xf32> to vector<16x32xf32>
    %178 = arith.mulf %176, %177 : vector<16x32xf32>
    %179 = vector.broadcast %118 : vector<1x32xf32> to vector<16x32xf32>
    %180 = arith.addf %178, %179 : vector<16x32xf32>
    %c0_83 = arith.constant 0 : index
    %c0_84 = arith.constant 0 : index
    %181 = vector.load %arg14[%c0_83, %c0_84] : memref<16x32xf32, #tpu.memory_space<vmem>>, vector<16x32xf32>
    tpu.vector_store %arg14[%c0_83, %c0_84], %180 {strides = array<i32>} : memref<16x32xf32, #tpu.memory_space<vmem>>, vector<16x32xf32>,
    return
  }
  func.func @transform_0(%arg0: i32, %arg1: i32) -> (i32, i32) {
    %c0_i32 = arith.constant 0 : i32
    %c0_i32_0 = arith.constant 0 : i32
    return %arg0, %c0_i32 : i32, i32
  }
  func.func @transform_1(%arg0: i32, %arg1: i32) -> (i32, i32, i32) {
    %c0_i32 = arith.constant 0 : i32
    %c0_i32_0 = arith.constant 0 : i32
    %c0_i32_1 = arith.constant 0 : i32
    return %arg0, %c0_i32, %c0_i32_0 : i32, i32, i32
  }
  func.func @transform_2(%arg0: i32, %arg1: i32) -> (i32, i32, i32) {
    %c0_i32 = arith.constant 0 : i32
    %c0_i32_0 = arith.constant 0 : i32
    %c0_i32_1 = arith.constant 0 : i32
    return %arg1, %c0_i32, %c0_i32_0 : i32, i32, i32
  }
  func.func @transform_3(%arg0: i32, %arg1: i32) -> (i32, i32, i32) {
    %c0_i32 = arith.constant 0 : i32
    %c0_i32_0 = arith.constant 0 : i32
    %c0_i32_1 = arith.constant 0 : i32
    return %arg1, %c0_i32, %c0_i32_0 : i32, i32, i32
  }
  func.func @transform_4(%arg0: i32, %arg1: i32) -> (i32, i32, i32, i32) {
    %c0_i32 = arith.constant 0 : i32
    %c0_i32_0 = arith.constant 0 : i32
    %c0_i32_1 = arith.constant 0 : i32
    %c0_i32_2 = arith.constant 0 : i32
    return %arg1, %c0_i32, %c0_i32_0, %c0_i32_1 : i32, i32, i32, i32
  }
  func.func @transform_5(%arg0: i32, %arg1: i32) -> (i32, i32, i32) {
    %c0_i32 = arith.constant 0 : i32
    %c0_i32_0 = arith.constant 0 : i32
    %c0_i32_1 = arith.constant 0 : i32
    return %arg1, %c0_i32, %c0_i32_0 : i32, i32, i32
  }
  func.func @transform_6(%arg0: i32, %arg1: i32) -> (i32, i32, i32) {
    %c0_i32 = arith.constant 0 : i32
    %c0_i32_0 = arith.constant 0 : i32
    %c0_i32_1 = arith.constant 0 : i32
    return %arg1, %c0_i32, %c0_i32_0 : i32, i32, i32
  }
  func.func @transform_7(%arg0: i32, %arg1: i32) -> (i32, i32, i32) {
    %c0_i32 = arith.constant 0 : i32
    %c0_i32_0 = arith.constant 0 : i32
    %c0_i32_1 = arith.constant 0 : i32
    return %arg1, %c0_i32, %c0_i32_0 : i32, i32, i32
  }
  func.func @transform_8(%arg0: i32, %arg1: i32) -> (i32, i32, i32) {
    %c0_i32 = arith.constant 0 : i32
    %c0_i32_0 = arith.constant 0 : i32
    %c0_i32_1 = arith.constant 0 : i32
    return %arg1, %c0_i32, %c0_i32_0 : i32, i32, i32
  }
  func.func @transform_9(%arg0: i32, %arg1: i32) -> (i32, i32, i32) {
    %c0_i32 = arith.constant 0 : i32
    %c0_i32_0 = arith.constant 0 : i32
    %c0_i32_1 = arith.constant 0 : i32
    return %arg1, %c0_i32, %c0_i32_0 : i32, i32, i32
  }
  func.func @transform_10(%arg0: i32, %arg1: i32) -> (i32, i32, i32) {
    %c0_i32 = arith.constant 0 : i32
    %c0_i32_0 = arith.constant 0 : i32
    %c0_i32_1 = arith.constant 0 : i32
    return %arg1, %c0_i32, %c0_i32_0 : i32, i32, i32
  }
  func.func @transform_11(%arg0: i32, %arg1: i32) -> (i32, i32, i32) {
    %c0_i32 = arith.constant 0 : i32
    %c0_i32_0 = arith.constant 0 : i32
    %c0_i32_1 = arith.constant 0 : i32
    return %arg1, %c0_i32, %c0_i32_0 : i32, i32, i32
  }
  func.func @transform_12(%arg0: i32, %arg1: i32) -> (i32, i32) {
    %c0_i32 = arith.constant 0 : i32
    %c0_i32_0 = arith.constant 0 : i32
    return %arg0, %c0_i32 : i32, i32
  }
}

</mosaic_0001>

<bundles_post_ra>
// kernel: tpu_custom_call.1
= control target key start
LH: loop header
LB: loop body
LE: loop exit
PB: predicated region body
PF: predicated region fallthrough
CT: control target
= control target key end

     0   :  { %s3888_s0 = inlined_call_operand.hbm [shape: f32[16,32], index: 0, kind: input, shape index: {}]   ;;  %s3889_s1 = inlined_call_operand.hbm [shape: f32[2,8,8], index: 1, kind: input, shape index: {}]   ;;  %s3890_s2 = inlined_call_operand.vmem [shape: f32[2,32,96], index: 2, kind: input, shape index: {}]   ;;  %s3891_s3 = inlined_call_operand.vmem [shape: f32[2,1,96], index: 3, kind: input, shape index: {}]   ;;  %s3892_s4 = inlined_call_operand.vmem [shape: f32[2,4,8,32], index: 4, kind: input, shape index: {}]   ;;  %s3893_s5 = inlined_call_operand.vmem [shape: f32[2,1,32], index: 5, kind: input, shape index: {}]   ;;  %s3894_s6 = inlined_call_operand.vmem [shape: f32[2,1,32], index: 6, kind: input, shape index: {}]   ;;  %s3895_s7 = inlined_call_operand.vmem [shape: f32[2,1,32], index: 7, kind: input, shape index: {}]   ;;  %s3896_s8 = inlined_call_operand.vmem [shape: f32[2,32,64], index: 8, kind: input, shape index: {}]   ;;  %s3897_s9 = inlined_call_operand.vmem [shape: f32[2,1,64], index: 9, kind: input, shape index: {}]   ;;  %s3898_s10 = inlined_call_operand.vmem [shape: f32[2,64,32], index: 10, kind: input, shape index: {}]   ;;  %s3899_s11 = inlined_call_operand.vmem [shape: f32[2,1,32], index: 11, kind: input, shape index: {}]   ;;  %s3900_s12 = inlined_call_operand.hbm [shape: f32[16,32], index: 12, kind: output, shape index: {}]  }
   0x1   :  { %3906 = sst [smem:[#allocation13_spill]] %s3888_s0 }
   0x2   :  { %3907 = sst [smem:[#allocation14_spill]] %s3889_s1 }
   0x3   :  { %3908 = sst [smem:[#allocation15_spill]] %s3890_s2 }
   0x4   :  { %3909 = sst [smem:[#allocation16_spill]] %s3892_s4 }
   0x5   :  { %17 = vsyncpa [#allocation3], 0 }
   0x6   :  { %18 = vsyncpa [#allocation6], 0 }
   0x7   :  { %19 = vsyncpa [#allocation4], 0  ;;  %s3474_s21 = smov 0   ;;  %s3476_s22 = smov 0  }
   0x8   :  { %s3478_s23 = smov 0  }
   0x9 LB: > { %3910 = sst [smem:[#allocation11_spill]] %s3383_s22  ;;  %s3904_s24 = sadd.s32 4294967295, %s3387_s23   ;;  %s3387_s23 = sphi %s3478_s23, %s25_s23   ;;  %s3383_s22 = sphi %s3476_s22, %s3926_s22   ;;  %s3379_s21 = sphi %s3474_s21, %s3925_s21  }
   0xa   : > { %s34_s25 = sadd.s32 1, %s3383_s22  ;;  %p2846_p1 = scmp.ge.s32.totalorder %s3387_s23, 1 }
   0xb   : > { %p35_p0 = scmp.ge.s32.totalorder %s34_s25, 2  ;;  %p380_p2 = scmp.lt.s32.totalorder %s3387_s23, 3 }
   0xc   : > { %p3501_p4 = scmp.eq.s32.totalorder %s3904_s24, 0  ;;  %s3389_s28 = smov [#allocation2]  }
   0xd   : > { %s3928_s25 = smov (%p35_p0, %s34_s25), 0  ;;  %p3495_p3 = pnand %p2846_p1, %p380_p2 }
   0xe   : > { %3911 = sst [smem:[#allocation12_spill]] %s3928_s25  ;;  %s395_s29 = sshll.u32 %s3389_s28, 4  ;;  %s396_s29 = int_to_ptr.vmem [resolvable:$true] %s395_s29 }
   0xf   : > { %s3912_s26 = scalar_select %p3495_p3, 1, 0 }
  0x10   : > { %s3913_s27 = scalar_select %p3501_p4, 1, 0 }
  0x11   : > { %p3174_p5 = pneg %p3495_p3  ;;  %s3390_s13 = smov [#allocation5]  }
  0x12   : > { %s411_s14 = sshll.u32 %s3390_s13, 4  ;;  %s3915_s0 = sld [smem:[#allocation13_spill]]  ;;  %s3513_s14 = int_to_ptr.vmem [resolvable:$true] %s411_s14 }
  0x13   : > { %p3509_p6 = pnand %p3501_p4, %p3174_p5 }
  0x15   : > { %p3273_p8 = pneg %p3509_p6 }
  0x18   : > { %s3271_s17 = scalar_lea.hbm %s3915_s0, 256 }
  0x19   : > { %p3272_p7 = scmp.ne.s32.totalorder %s3915_s0, %s3271_s17  ;;  %p3278_p11 = scmp.lt.u32.totalorder %s3271_s17, %s3915_s0 }
  0x1b   : > { %p3274_p9 = pnand %p3273_p8, %p3272_p7 }
  0x1d   : > { %p3275_p10 = pneg %p3274_p9 }
  0x1f   : > { %p3280_p12 = pnand %p3278_p11, %p3275_p10 }
  0x21   : > { %3283 = shalt.err (!%p3280_p12)
}
  0x22   : > { %s3284_s13 = scalar_lea.vmem %s396_s29, 256  ;;  %p3292_p2 = scmp.lt.s32.totalorder %s396_s29, %s396_s29 }
  0x23   : > { %p3285_p13 = scmp.ne.s32.totalorder %s396_s29, %s3284_s13  ;;  %p3293_p5 = scmp.lt.s32.totalorder %s3284_s13, %s3284_s13 }
  0x25   : > { %p3287_p0 = pnand %p3285_p13, %p3273_p8  ;;  %p3294_p4 = por %p3293_p5, %p3292_p2 }
  0x27   : > { %p3288_p1 = pneg %p3287_p0 }
  0x29   : > { %p3295_p3 = pnand %p3294_p4, %p3288_p1 }
  0x2b   : > { %3298 = shalt.err (!%p3295_p3)
}
  0x2c   : > { %s3391_s15 = smov 128   ;;  %s3392_s16 = smov 8  }
  0x2d   : > { %3177 = dma.hbm_to_vmem [thread:$0]  (!%p3509_p6), %s3915_s0, 256, %s396_s29, [#allocation3], %s3391_s15, %s3391_s15, %s3392_s16  }
  0x2e   : > { %s3916_s1 = sld [smem:[#allocation14_spill]] }
  0x34   : > { %s3299_s28 = scalar_lea.hbm %s3916_s1, 256 }
  0x35   : > { %p3300_p7 = scmp.ne.s32.totalorder %s3916_s1, %s3299_s28  ;;  %p3306_p9 = scmp.lt.u32.totalorder %s3299_s28, %s3916_s1 }
  0x37   : > { %p3302_p3 = pnand %p3300_p7, %p3273_p8 }
  0x39   : > { %p3303_p4 = pneg %p3302_p3 }
  0x3b   : > { %p3308_p10 = pnand %p3306_p9, %p3303_p4 }
  0x3d   : > { %3311 = shalt.err (!%p3308_p10)
}
  0x3e   : > { %s3312_s29 = scalar_lea.vmem %s3513_s14, 256  ;;  %p3320_p0 = scmp.lt.s32.totalorder %s3513_s14, %s3513_s14 }
  0x3f   : > { %p3313_p11 = scmp.ne.s32.totalorder %s3513_s14, %s3312_s29  ;;  %p3321_p1 = scmp.lt.s32.totalorder %s3312_s29, %s3312_s29 }
  0x41   : > { %p3315_p12 = pnand %p3313_p11, %p3273_p8  ;;  %p3322_p2 = por %p3321_p1, %p3320_p0 }
  0x43   : > { %p3316_p13 = pneg %p3315_p12 }
  0x45   : > { %p3323_p5 = pnand %p3322_p2, %p3316_p13 }
  0x47   : > { %3326 = shalt.err (!%p3323_p5)
}
  0x48   : > { %3180 = dma.hbm_to_vmem [thread:$0]  (!%p3509_p6), %s3916_s1, 256, %s3513_s14, [#allocation6], %s3391_s15, %s3391_s15, %s3392_s16  }
  0x49   : > { %p3917_p7 = scmp.ne.s32.totalorder %s3912_s26, 0 }
  0x4a   : > { %p3918_p3 = scmp.ne.s32.totalorder (!%p3917_p7), %s3913_s27, 0 }
  0x4b   : > { %495 = sbr.rel (%p3917_p7) target bundleno = 4298 (0x10ca), region = 68 }
  0x52   : > { %3366 = dma.done.wait (%p3918_p3), [#allocation3], 256  }
  0x53   : > { %3368 = vsyncadd (%p3918_p3), [#allocation3], 4294967040 }
  0x54   : > { %3370 = dma.done.wait (%p3918_p3), [#allocation6], 256  }
  0x55   : > { %3372 = vsyncadd (%p3918_p3), [#allocation6], 4294967040  ;;  %p571_p8 = scmp.lt.s32.totalorder %s3379_s21, 1  ;;  %s3919_s2 = sld [smem:[#allocation15_spill]] }
  0x56   : > { %s3920_s4 = sld [smem:[#allocation16_spill]]  ;;  %p2861_p6 = scmp.ne.s32.totalorder %s3379_s21, 0 }
  0x57   : > { %s3574_s25 = scalar_select %p571_p8, %s3379_s21, 1 }
  0x58   : > { %613 = sbr.rel (%p2861_p6) target bundleno = 95 (0x5f), region = 80  ;;  %v614_v0 = vld [vmem:[#allocation2] sm:$0xff] (!%p2861_p6)  ;;  %vm616_vm0 = vcmask (!%p2861_p6), 261120   ;;  %v615_v1 = vld [vmem:[#allocation2 + $0x8] sm:$0xff] (!%p2861_p6) }
  0x59   : > { %s2913_s26 = sshll.u32 %s3574_s25, 5  ;;  %s589_s0 = scalar_lea.vmem %s3894_s6, %s3574_s25  ;;  %617 = vst.msk [vmem:[#allocation7] sm:$0xff] (!%p2861_p6), %vm616_vm0, %v614_v0  ;;  %618 = vst.msk [vmem:[#allocation7 + $0x8] sm:$0xff] (!%p2861_p6), %vm616_vm0, %v615_v1 }
  0x5a   : > { %s592_s14 = scalar_lea.vmem %s3895_s7, %s3574_s25  ;;  %s3604_s16 = scalar_lea.vmem %s3896_s8, %s2913_s26 }
  0x5b   : > { %s575_s17 = scalar_lea.vmem %s3919_s2, %s2913_s26  ;;  %s600_s2 = scalar_lea.vmem %s3897_s9, %s3574_s25 }
  0x5c   : > { %s3587_s20 = scalar_lea.vmem %s3920_s4, %s2913_s26  ;;  %s2916_s4 = sshll.u32 %s3574_s25, 6 }
  0x5d   : > { %s3614_s29 = scalar_lea.vmem %s3898_s10, %s2916_s4  ;;  %s608_s1 = scalar_lea.vmem %s3899_s11, %s3574_s25 }
  0x5f PF: > { %v623_v2 = vld [vmem:[%s575_s17] sm:$0xff]  ;;  %v624_v3 = vld [vmem:[%s575_s17 + $0x8] sm:$0xff]  ;;  %v625_v4 = vld [vmem:[%s575_s17 + $0x10] sm:$0xff]  ;;  %vm634_vm1 = vcmask 261120   ;;  %v3393_v10 = vmov 0.0   ;;  %vm3394_vm2 = vmmov 0   ;;  %s3921_s26 = scalar_lea.vmem %s3891_s3, %s3574_s25 }
  0x60   : > { %v3124_v5 = vpack.c.bf16 %v624_v3, %v623_v2  ;;  %v626_v6 = vld [vmem:[%s575_s17 + $0x18] sm:$0xff]  ;;  %v3621_v7 = vld [vmem:[#allocation7] sm:$0xff]  ;;  %v3625_v9 = vld [vmem:[#allocation7 + $0x8] sm:$0xff]  ;;  %3004 = vmatprep.subr.mxu0 %v3393_v10  ;;  %3006 = vmatprep.mubr.msk.f32.mxu0 %vm3394_vm2, %v3393_v10  ;;  %s3395_s15 = smov 96   ;;  %s3396_s17 = smov 64   ;;  %vm719_vm3 = vcmask 64512  }
  0x61   : > { %v3128_v8 = vpack.c.bf16 %v626_v6, %v625_v4  ;;  %2991 = vmatprep.mubr.msk.f32.mxu1 %vm634_vm1, %v3621_v7  ;;  %v2862_v11 = vld [vmem:[%s3921_s26] ss:$0 sm:$0xff]  ;;  %s3397_s30 = smov 120   ;;  %v3663_v20 = vld [vmem:[#allocation5] sm:$0xff]  ;;  %v3666_v25 = vld [vmem:[#allocation5 + $0x8] sm:$0xff]  ;;  %s3398_s27 = smov 88  }
  0x62   : > { %3125 = vmatprep.subr.bf16.mxu1 %v3124_v5  ;;  %s3399_s18 = smov 80   ;;  %s3400_s19 = smov 56   ;;  %vm2551_vm4 = vcmask 523264  }
  0x63   : > { %3127 = vmatpush3.bf16.msra.mxu1 %v3124_v5  ;;  %s3401_s28 = smov 112   ;;  %s3402_s13 = smov 48  }
  0x64   : > { %3129 = vmatprep.subr.bf16.mxu1 %v3128_v8  ;;  %s3403_s22 = smov 72   ;;  %s3404_s24 = smov 104  }
  0x65   : > { %s3405_s4 = smov 40  }
  0x67   : > { %3131 = vmatpush3.bf16.msra.mxu1 %v3128_v8 }
  0x68   : > { %2994 = vmatprep.subr.mxu1 %v3393_v10 }
  0x6a   : > { %2992 = vmatmul.mubr.msk.f32.vlgmr.msra.gmra.mrb[0].mxu1 %vm634_vm1, %v3625_v9 }
  0x6b   : > { %2996 = vmatprep.mubr.msk.f32.mxu1 %vm3394_vm2, %v3393_v10 }
 0x13d   : > { %v2993_v12 = vpop.f32.mrb[0].mxu1 }
 0x13e   : > { %v707_v13 = vpop.f32.mrb[1].mxu1  ;;  %v3643_v15 = vadd.f32 %v2993_v12, %v2862_v11 }
 0x13f   : > { %v3640_v14 = vadd.f32 %v2862_v11, %v707_v13 }
 0x141   : > { %717 = vrot.lane.b32.xlu0 %v3640_v14, %s3395_s15 }
 0x145   : > { %795 = vrot.lane.b32.xlu0 %v3643_v15, %s3395_s15 }
 0x149   : > { %973 = vrot.lane.b32.xlu0 %v3643_v15, %s3396_s17 }
 0x14d   : > { %1128 = vrot.lane.b32.xlu0 %v3643_v15, %s3397_s30 }
 0x1b3   : > { %v718_v16 = vpop.permute.xlu0 %717 }
 0x1b4   : > { %2995 = vmatpush3.xpose.msk.msra.mxu1 %vm719_vm3, %v718_v16 }
 0x1b5   : > { %2999 = vmatprep.subr.mxu1 %v3393_v10 }
 0x1b7   : > { %2997 = vmatmul.mubr.msk.f32.vlgmr.msra.gmra.mrb[2].mxu1 %vm719_vm3, %v3640_v14  ;;  %v796_v17 = vpop.permute.xlu0 %795 }
 0x1b8   : > { %3000 = vmatpush3.xpose.msk.msra.mxu1 %vm719_vm3, %v796_v17  ;;  %3001 = vmatprep.mubr.msk.f32.mxu1 %vm3394_vm2, %v3393_v10 }
 0x1b9   : > { %3009 = vmatprep.subr.mxu1 %v3393_v10 }
 0x1bb   : > { %3002 = vmatmul.mubr.msk.f32.vlgmr.msra.gmra.mrb[4].mxu1 %vm719_vm3, %v3643_v15  ;;  %v974_v18 = vpop.permute.xlu0 %973 }
 0x1bc   : > { %3010 = vmatpush3.msra.mxu1 %v974_v18  ;;  %3011 = vmatprep.mubr.msk.f32.mxu1 %vm3394_vm2, %v3393_v10 }
 0x1bd   : > { %3019 = vmatprep.subr.mxu1 %v3393_v10 }
 0x1bf   : > { %v1129_v31 = vpop.permute.xlu0 %1128 }
 0x28a   : > { %v790_v19 = vpop.f32.mrb[2].mxu1 }
 0x28b   : > { %v871_v21 = vmul.f32 0.35355338, %v790_v19  ;;  %v2998_v22 = vpop.f32.mrb[3].mxu1 }
 0x28d   : > { %v873_v23 = vadd.f32 %v871_v21, %v3663_v20 }
 0x28e   : > { %v867_v24 = vpop.f32.mrb[4].mxu1 }
 0x28f   : > { %v872_v26 = vmul.f32 0.35355338, %v867_v24  ;;  %v3003_v27 = vpop.f32.mrb[5].mxu1  ;;  %v875_v28 = vsel %vm719_vm3, %v873_v23, -inf }
 0x290   : > { %876 = vmax.xlane.f32.xlu0 %v875_v28 }
 0x291   : > { %v874_v29 = vadd.f32 %v872_v26, %v3666_v25 }
 0x293   : > { %v878_v30 = vsel %vm719_vm3, %v874_v29, -inf }
 0x294   : > { %879 = vmax.xlane.f32.xlu1 %v878_v30 }
 0x2a6   : > { %897 = vrot.lane.b32.xlu0 %v3640_v14, %s3396_s17 }
 0x2aa   : > { %1050 = vrot.lane.b32.xlu0 %v3640_v14, %s3397_s30 }
 0x31d   : > { %v877_v32 = vpop.xlane.xlu0 %876 }
 0x31e   : > { %v881_v39 = vsub.f32 %v873_v23, %v877_v32  ;;  %v1049_v32 = vld [vmem:[%s3587_s20] sm:$0xff] }
 0x320   : > { %v883_v40 = vmul.f32 1.442695, %v881_v39 }
 0x321   : > { %v880_v33 = vpop.xlane.xlu1 %879  ;;  %v898_v34 = vpop.permute.xlu0 %897 }
 0x322   : > { %v882_v35 = vsub.f32 %v874_v29, %v880_v33  ;;  %3005 = vmatpush3.msra.mxu0 %v898_v34 }
 0x323   : > { %3014 = vmatprep.subr.mxu0 %v3393_v10 }
 0x324   : > { %v885_v36 = vmul.f32 1.442695, %v882_v35 }
 0x325   : > { %v1051_v51 = vpop.permute.xlu0 %1050 }
 0x326   : > { %3231 = vpow2.f32 %v885_v36 }
 0x327   : > { %3233 = vpow2.f32 %v883_v40 }
 0x330   : > { %v3232_v37 = vpop.eup %3231 }
 0x331   : > { %v890_v38 = vsel %vm719_vm3, %v3232_v37, 0.0  ;;  %v3234_v41 = vpop.eup %3233 }
 0x332   : > { %891 = vadd.xlane.f32.xlu1 %v890_v38  ;;  %v887_v42 = vsel %vm719_vm3, %v3234_v41, 0.0 }
 0x343   : > { %1130 = vrot.lane.b32.xlu1 %v3643_v15, %s3398_s27 }
 0x367   : > { %888 = vadd.xlane.f32.xlu1 %v887_v42 }
 0x378   : > { %1052 = vrot.lane.b32.xlu1 %v3640_v14, %s3398_s27 }
 0x37c   : > { %1550 = vrot.lane.b32.xlu1 %v3640_v14, %s3399_s18 }
 0x3bf   : > { %v892_v43 = vpop.xlane.xlu1 %891 }
 0x3c0   : > { %3235 = vrcp.f32 %v892_v43 }
 0x3c3   : > { %v1131_v46 = vpop.permute.xlu1 %1130 }
 0x3ca   : > { %v3236_v44 = vpop.eup %3235 }
 0x3cb   : > { %v896_v45 = vmul.f32 %v3236_v44, %v3232_v37 }
 0x3cd   : > { %3012 = vmatmul.mubr.msk.f32.vlgmr.msra.gmra.mrb[6].mxu1 %vm719_vm3, %v896_v45 }
 0x3ce   : > { %3020 = vmatpush3.xpose.msk.msra.mxu1 %vm719_vm3, %v1131_v46  ;;  %3021 = vmatprep.mubr.msk.f32.mxu1 %vm3394_vm2, %v3393_v10 }
 0x3cf   : > { %3029 = vmatprep.subr.mxu1 %v3393_v10 }
 0x3d1   : > { %3022 = vmatmul.mubr.msk.f32.vlgmr.msra.gmra.mrb[8].mxu1 %vm719_vm3, %v1129_v31  ;;  %v2877_v31 = vld [vmem:[%s3587_s20 + $0x8] sm:$0xff] }
 0x3d2   : > { %3031 = vmatprep.mubr.msk.f32.mxu1 %vm3394_vm2, %v3393_v10 }
 0x3f4   : > { %v889_v47 = vpop.xlane.xlu1 %888 }
 0x3f5   : > { %3237 = vrcp.f32 %v889_v47 }
 0x3f8   : > { %v1053_v50 = vpop.permute.xlu1 %1052 }
 0x3fc   : > { %v1551_v22 = vpop.permute.xlu1 %1550 }
 0x3ff   : > { %v3238_v48 = vpop.eup %3237 }
 0x400   : > { %v895_v49 = vmul.f32 %v3238_v48, %v3234_v41 }
 0x402   : > { %3007 = vmatmul.mubr.msk.f32.vlgmr.msra.gmra.mrb[0].mxu0 %vm719_vm3, %v895_v49 }
 0x403   : > { %3015 = vmatpush3.xpose.msk.msra.mxu0 %vm719_vm3, %v1053_v50  ;;  %3016 = vmatprep.mubr.msk.f32.mxu0 %vm3394_vm2, %v3393_v10 }
 0x404   : > { %3024 = vmatprep.subr.mxu0 %v3393_v10 }
 0x406   : > { %3017 = vmatmul.mubr.msk.f32.vlgmr.msra.gmra.mrb[2].mxu0 %vm719_vm3, %v1051_v51 }
 0x407   : > { %3026 = vmatprep.mubr.msk.f32.mxu0 %vm3394_vm2, %v3393_v10 }
 0x4a0   : > { %v3698_v52 = vpop.f32.mrb[6].mxu1 }
 0x4a1   : > { %v3013_v53 = vpop.f32.mrb[7].mxu1 }
 0x4a4   : > { %v1202_v54 = vpop.f32.mrb[8].mxu1 }
 0x4a5   : > { %v1207_v55 = vmul.f32 0.35355338, %v1202_v54  ;;  %v3023_v56 = vpop.f32.mrb[9].mxu1 }
 0x4a7   : > { %v1209_v57 = vadd.f32 %v1207_v55, %v3666_v25 }
 0x4a9   : > { %v1213_v58 = vsel %vm719_vm3, %v1209_v57, -inf }
 0x4aa   : > { %1214 = vmax.xlane.f32.xlu0 %v1213_v58  ;;  %v2888_v58 = vld [vmem:[%s3587_s20 + $0x10] sm:$0xff] }
 0x4c0   : > { %1308 = vrot.lane.b32.xlu0 %v3643_v15, %s3400_s19 }
 0x4c4   : > { %1548 = vrot.lane.b32.xlu0 %v3640_v14, %s3401_s28 }
 0x4c8   : > { %1628 = vrot.lane.b32.xlu0 %v3643_v15, %s3399_s18 }
 0x4d5   : > { %v3706_v59 = vpop.f32.mrb[0].mxu0 }
 0x4d6   : > { %v3008_v60 = vpop.f32.mrb[1].mxu0 }
 0x4d9   : > { %v1124_v61 = vpop.f32.mrb[2].mxu0 }
 0x4da   : > { %v3018_v62 = vpop.f32.mrb[3].mxu0  ;;  %v1206_v63 = vmul.f32 0.35355338, %v1124_v61 }
 0x4dc   : > { %v1208_v0 = vadd.f32 %v1206_v63, %v3663_v20 }
 0x4de   : > { %v1210_v1 = vsel %vm719_vm3, %v1208_v0, -inf }
 0x4e7   : > { %1211 = vmax.xlane.f32.xlu0 %v1210_v1 }
 0x4fd   : > { %1232 = vrot.lane.b32.xlu0 %v3640_v14, %s3400_s19 }
 0x501   : > { %1730 = vrot.lane.b32.xlu0 %v3640_v14, %s3402_s13 }
 0x505   : > { %1969 = vrot.lane.b32.xlu0 %v3640_v14, %s3403_s22 }
 0x509   : > { %2047 = vrot.lane.b32.xlu0 %v3643_v15, %s3403_s22 }
 0x50d   : > { %1967 = vrot.lane.b32.xlu0 %v3640_v14, %s3404_s24 }
 0x511   : > { %2045 = vrot.lane.b32.xlu0 %v3643_v15, %s3404_s24 }
 0x537   : > { %v1215_v2 = vpop.xlane.xlu0 %1214 }
 0x538   : > { %v1217_v3 = vsub.f32 %v1209_v57, %v1215_v2 }
 0x53a   : > { %v1220_v4 = vmul.f32 1.442695, %v1217_v3 }
 0x53b   : > { %v1309_v5 = vpop.permute.xlu0 %1308 }
 0x53c   : > { %3239 = vpow2.f32 %v1220_v4  ;;  %3030 = vmatpush3.msra.mxu1 %v1309_v5 }
 0x53d   : > { %3044 = vmatprep.subr.mxu1 %v3393_v10 }
 0x53f   : > { %v1549_v11 = vpop.permute.xlu0 %1548 }
 0x543   : > { %v1629_v12 = vpop.permute.xlu0 %1628 }
 0x546   : > { %v3240_v6 = vpop.eup %3239 }
 0x547   : > { %v1225_v8 = vsel %vm719_vm3, %v3240_v6, 0.0 }
 0x548   : > { %1226 = vadd.xlane.f32.xlu1 %v1225_v8 }
 0x559   : > { %1626 = vrot.lane.b32.xlu1 %v3643_v15, %s3401_s28 }
 0x574   : > { %v1212_v13 = vpop.xlane.xlu0 %1211 }
 0x575   : > { %v1216_v16 = vsub.f32 %v1208_v0, %v1212_v13 }
 0x577   : > { %v1218_v17 = vmul.f32 1.442695, %v1216_v16 }
 0x578   : > { %v1233_v18 = vpop.permute.xlu0 %1232 }
 0x579   : > { %3241 = vpow2.f32 %v1218_v17  ;;  %3025 = vmatpush3.msra.mxu0 %v1233_v18 }
 0x57a   : > { %3034 = vmatprep.subr.mxu0 %v2877_v31 }
 0x57c   : > { %v1731_v47 = vpop.permute.xlu0 %1730 }
 0x580   : > { %v1970_v62 = vpop.permute.xlu0 %1969 }
 0x583   : > { %v3242_v19 = vpop.eup %3241 }
 0x584   : > { %v1222_v21 = vsel %vm719_vm3, %v3242_v19, 0.0  ;;  %v2048_v2 = vpop.permute.xlu0 %2047 }
 0x585   : > { %1223 = vadd.xlane.f32.xlu1 %v1222_v21 }
 0x588   : > { %v1968_v4 = vpop.permute.xlu0 %1967 }
 0x5d5   : > { %v1227_v23 = vpop.xlane.xlu1 %1226 }
 0x5d6   : > { %3243 = vrcp.f32 %v1227_v23 }
 0x5d9   : > { %v1627_v27 = vpop.permute.xlu1 %1626 }
 0x5e0   : > { %v3244_v24 = vpop.eup %3243 }
 0x5e1   : > { %v1231_v26 = vmul.f32 %v3244_v24, %v3240_v6 }
 0x5e3   : > { %3032 = vmatmul.mubr.msk.f32.vlgmr.msra.gmra.mrb[10].mxu1 %vm719_vm3, %v1231_v26 }
 0x5e4   : > { %3045 = vmatpush3.xpose.msk.msra.mxu1 %vm719_vm3, %v1551_v22  ;;  %3046 = vmatprep.mubr.msk.f32.mxu1 %vm3394_vm2, %v3393_v10 }
 0x5e5   : > { %3049 = vmatprep.subr.mxu1 %v3393_v10 }
 0x5e7   : > { %3047 = vmatmul.mubr.msk.f32.vlgmr.msra.gmra.mrb[12].mxu1 %vm719_vm3, %v1549_v11 }
 0x5e8   : > { %3050 = vmatpush3.xpose.msk.msra.mxu1 %vm719_vm3, %v1629_v12  ;;  %3051 = vmatprep.mubr.msk.f32.mxu1 %vm3394_vm2, %v3393_v10  ;;  %v2046_v12 = vpop.permute.xlu0 %2045 }
 0x5e9   : > { %3059 = vmatprep.subr.mxu1 %v3393_v10 }
 0x5eb   : > { %3052 = vmatmul.mubr.msk.f32.vlgmr.msra.gmra.mrb[14].mxu1 %vm719_vm3, %v1627_v27 }
 0x5ec   : > { %3061 = vmatprep.mubr.msk.f32.mxu1 %vm3394_vm2, %v3393_v10 }
 0x612   : > { %v1224_v28 = vpop.xlane.xlu1 %1223 }
 0x613   : > { %3245 = vrcp.f32 %v1224_v28 }
 0x61d   : > { %v3246_v29 = vpop.eup %3245 }
 0x61e   : > { %v1230_v30 = vmul.f32 %v3246_v29, %v3242_v19 }
 0x620   : > { %3027 = vmatmul.mubr.msk.f32.vlgmr.msra.gmra.mrb[4].mxu0 %vm719_vm3, %v1230_v30 }
 0x621   : > { %3035 = vmatpush3.msra.mxu0 %v2877_v31 }
 0x622   : > { %3039 = vmatprep.subr.mxu0 %v1049_v32 }
 0x6b6   : > { %v1380_v33 = vpop.f32.mrb[10].mxu1 }
 0x6b7   : > { %v3033_v34 = vpop.f32.mrb[11].mxu1 }
 0x6ba   : > { %v1622_v35 = vpop.f32.mrb[12].mxu1 }
 0x6bb   : > { %v1704_v36 = vmul.f32 0.35355338, %v1622_v35  ;;  %v3048_v37 = vpop.f32.mrb[13].mxu1 }
 0x6bd   : > { %v1706_v38 = vadd.f32 %v1704_v36, %v3663_v20 }
 0x6be   : > { %v1700_v39 = vpop.f32.mrb[14].mxu1 }
 0x6bf   : > { %v1705_v40 = vmul.f32 0.35355338, %v1700_v39  ;;  %v3053_v41 = vpop.f32.mrb[15].mxu1  ;;  %v1708_v42 = vsel %vm719_vm3, %v1706_v38, -inf }
 0x6c0   : > { %1709 = vmax.xlane.f32.xlu1 %v1708_v42 }
 0x6c1   : > { %v1707_v43 = vadd.f32 %v1705_v40, %v3666_v25 }
 0x6c3   : > { %v1711_v44 = vsel %vm719_vm3, %v1707_v43, -inf }
 0x6c4   : > { %1712 = vmax.xlane.f32.xlu1 %v1711_v44 }
 0x6f3   : > { %v1304_v45 = vpop.f32.mrb[4].mxu0 }
 0x6f4   : > { %v3028_v46 = vpop.f32.mrb[5].mxu0  ;;  %3036 = vmatprep.mubr.msk.f32.mxu0 %vm719_vm3, %v1304_v45 }
 0x6f5   : > { %3037 = vmatmul.mubr.msk.f32.vlgmr.msra.gmra.mrb[6].mxu0 %vm719_vm3, %v1380_v33 }
 0x6f6   : > { %3041 = vmatprep.mubr.msk.f32.mxu0 %vm719_vm3, %v3706_v59  ;;  %3040 = vmatpush3.msra.mxu0 %v1049_v32 }
 0x6f7   : > { %3054 = vmatprep.subr.mxu0 %v3393_v10 }
 0x6fd   : > { %3042 = vmatmul.mubr.msk.f32.vlgmr.msra.gmra.mrb[6].mxu0 %vm719_vm3, %v3698_v52 }
 0x6fe   : > { %3055 = vmatpush3.msra.mxu0 %v1731_v47  ;;  %3056 = vmatprep.mubr.msk.f32.mxu0 %vm3394_vm2, %v3393_v10 }
 0x6ff   : > { %3064 = vmatprep.subr.mxu0 %v2888_v58 }
 0x74d   : > { %v1710_v48 = vpop.xlane.xlu1 %1709 }
 0x74e   : > { %v1714_v49 = vsub.f32 %v1706_v38, %v1710_v48  ;;  %v2897_v38 = vld [vmem:[%s3587_s20 + $0x18] sm:$0xff]  ;;  %s3922_s20 = scalar_lea.vmem %s3893_s5, %s3574_s25 }
 0x750   : > { %v1716_v50 = vmul.f32 1.442695, %v1714_v49 }
 0x751   : > { %v1713_v51 = vpop.xlane.xlu1 %1712 }
 0x752   : > { %3247 = vpow2.f32 %v1716_v50  ;;  %v1715_v53 = vsub.f32 %v1707_v43, %v1713_v51 }
 0x754   : > { %v1718_v54 = vmul.f32 1.442695, %v1715_v53 }
 0x756   : > { %3249 = vpow2.f32 %v1718_v54 }
 0x75c   : > { %v3248_v55 = vpop.eup %3247 }
 0x75d   : > { %v1720_v56 = vsel %vm719_vm3, %v3248_v55, 0.0 }
 0x75e   : > { %1721 = vadd.xlane.f32.xlu1 %v1720_v56 }
 0x760   : > { %v3250_v57 = vpop.eup %3249 }
 0x761   : > { %v1723_v52 = vsel %vm719_vm3, %v3250_v57, 0.0 }
 0x762   : > { %1724 = vadd.xlane.f32.xlu1 %v1723_v52 }
 0x773   : > { %1806 = vrot.lane.b32.xlu1 %v3643_v15, %s3402_s13 }
 0x7eb   : > { %v1722_v59 = vpop.xlane.xlu1 %1721 }
 0x7ec   : > { %3251 = vrcp.f32 %v1722_v59 }
 0x7ef   : > { %v1725_v60 = vpop.xlane.xlu1 %1724 }
 0x7f0   : > { %3253 = vrcp.f32 %v1725_v60 }
 0x7f3   : > { %v1807_v61 = vpop.permute.xlu1 %1806 }
 0x7f4   : > { %3060 = vmatpush3.msra.mxu1 %v1807_v61 }
 0x7f5   : > { %3069 = vmatprep.subr.mxu1 %v3393_v10 }
 0x7f6   : > { %v3252_v63 = vpop.eup %3251 }
 0x7f7   : > { %v1728_v0 = vmul.f32 %v3252_v63, %v3248_v55  ;;  %v2443_v63 = vld [vmem:[%s3604_s16 + $0x8] sm:$0xff] }
 0x7f9   : > { %3057 = vmatmul.mubr.msk.f32.vlgmr.msra.gmra.mrb[8].mxu0 %vm719_vm3, %v1728_v0 }
 0x7fa   : > { %v3254_v1 = vpop.eup %3253  ;;  %3065 = vmatpush3.msra.mxu0 %v2888_v58 }
 0x7fb   : > { %v1729_v3 = vmul.f32 %v3254_v1, %v3250_v57  ;;  %3074 = vmatprep.subr.mxu0 %v3393_v10  ;;  %v2444_v1 = vld [vmem:[%s3604_s16 + $0x10] sm:$0xff] }
 0x7fd   : > { %3062 = vmatmul.mubr.msk.f32.vlgmr.msra.gmra.mrb[16].mxu1 %vm719_vm3, %v1729_v3 }
 0x7fe   : > { %3070 = vmatpush3.xpose.msk.msra.mxu1 %vm719_vm3, %v1970_v62  ;;  %3071 = vmatprep.mubr.msk.f32.mxu1 %vm3394_vm2, %v3393_v10  ;;  %v2442_v62 = vld [vmem:[%s3604_s16] sm:$0xff] }
 0x7ff   : > { %3079 = vmatprep.subr.mxu1 %v3393_v10  ;;  %v3132_v0 = vpack.c.bf16 %v2443_v63, %v2442_v62 }
 0x801   : > { %3072 = vmatmul.mubr.msk.f32.vlgmr.msra.gmra.mrb[18].mxu1 %vm719_vm3, %v1968_v4  ;;  %v2536_v4 = vld [vmem:[%s3614_s29] sm:$0xff] }
 0x802   : > { %3081 = vmatprep.mubr.msk.f32.mxu1 %vm3394_vm2, %v3393_v10 }
 0x8cc   : > { %v1802_v5 = vpop.f32.mrb[8].mxu0 }
 0x8cd   : > { %v3058_v6 = vpop.f32.mrb[9].mxu0  ;;  %3066 = vmatprep.mubr.msk.f32.mxu0 %vm719_vm3, %v1802_v5  ;;  %v2537_v5 = vld [vmem:[%s3614_s29 + $0x8] sm:$0xff] }
 0x8ce   : > { %v2538_v6 = vld [vmem:[%s3614_s29 + $0x10] sm:$0xff] }
 0x8d0   : > { %v1878_v8 = vpop.f32.mrb[16].mxu1 }
 0x8d1   : > { %v3063_v11 = vpop.f32.mrb[17].mxu1  ;;  %3067 = vmatmul.mubr.msk.f32.vlgmr.msra.gmra.mrb[6].mxu0 %vm719_vm3, %v1878_v8  ;;  %v3140_v8 = vpack.c.bf16 %v2537_v5, %v2536_v4 }
 0x8d2   : > { %3075 = vmatpush3.xpose.msk.msra.mxu0 %vm719_vm3, %v2048_v2  ;;  %3076 = vmatprep.mubr.msk.f32.mxu0 %vm3394_vm2, %v3393_v10  ;;  %v2445_v2 = vld [vmem:[%s3604_s16 + $0x18] sm:$0xff] }
 0x8d3   : > { %3084 = vmatprep.subr.mxu0 %v3393_v10  ;;  %v3136_v3 = vpack.c.bf16 %v2445_v2, %v2444_v1  ;;  %v2539_v11 = vld [vmem:[%s3614_s29 + $0x18] sm:$0xff] }
 0x8d4   : > { %v2041_v13 = vpop.f32.mrb[18].mxu1 }
 0x8d5   : > { %v2123_v16 = vmul.f32 0.35355338, %v2041_v13  ;;  %v3073_v17 = vpop.f32.mrb[19].mxu1  ;;  %3077 = vmatmul.mubr.msk.f32.vlgmr.msra.gmra.mrb[10].mxu0 %vm719_vm3, %v2046_v12  ;;  %v3144_v12 = vpack.c.bf16 %v2539_v11, %v2538_v6  ;;  %v2540_v13 = vld [vmem:[%s3614_s29 + $0x20] sm:$0xff] }
 0x8d6   : > { %3086 = vmatprep.mubr.msk.f32.mxu0 %vm3394_vm2, %v3393_v10 }
 0x8d7   : > { %v2125_v18 = vadd.f32 %v2123_v16, %v3663_v20  ;;  %v2541_v16 = vld [vmem:[%s3614_s29 + $0x28] sm:$0xff] }
 0x8d8   : > { %v3148_v17 = vpack.c.bf16 %v2541_v16, %v2540_v13 }
 0x8d9   : > { %v2127_v19 = vsel %vm719_vm3, %v2125_v18, -inf }
 0x8da   : > { %2128 = vmax.xlane.f32.xlu1 %v2127_v19 }
 0x967   : > { %v2129_v21 = vpop.xlane.xlu1 %2128 }
 0x968   : > { %v2133_v22 = vsub.f32 %v2125_v18, %v2129_v21 }
 0x96a   : > { %v2135_v23 = vmul.f32 1.442695, %v2133_v22 }
 0x96c   : > { %3255 = vpow2.f32 %v2135_v23 }
 0x976   : > { %v3256_v30 = vpop.eup %3255 }
 0x977   : > { %v2139_v10 = vsel %vm719_vm3, %v3256_v30, 0.0 }
 0x9a8   : > { %v2119_v24 = vpop.f32.mrb[10].mxu0 }
 0x9a9   : > { %v2124_v26 = vmul.f32 0.35355338, %v2119_v24  ;;  %v3078_v27 = vpop.f32.mrb[11].mxu0 }
 0x9aa   : > { %v3814_v27 = vld [vmem:[%s589_s0] ss:$0 sm:$0xff] }
 0x9ab   : > { %v2126_v28 = vadd.f32 %v2124_v26, %v3666_v25 }
 0x9ad   : > { %v2130_v29 = vsel %vm719_vm3, %v2126_v28, -inf }
 0x9ae   : > { %2131 = vmax.xlane.f32.xlu0 %v2130_v29 }
 0x9b2   : > { %2140 = vadd.xlane.f32.xlu0 %v2139_v10  ;;  %v3821_v10 = vld [vmem:[%s592_s14] ss:$0 sm:$0xff] }
 0x9c8   : > { %2149 = vrot.lane.b32.xlu0 %v3640_v14, %s3405_s4 }
 0xa3b   : > { %v2132_v20 = vpop.xlane.xlu0 %2131 }
 0xa3c   : > { %v2134_v31 = vsub.f32 %v2126_v28, %v2132_v20 }
 0xa3e   : > { %v2137_v32 = vmul.f32 1.442695, %v2134_v31 }
 0xa3f   : > { %v2141_v33 = vpop.xlane.xlu0 %2140 }
 0xa40   : > { %3257 = vpow2.f32 %v2137_v32 }
 0xa41   : > { %3259 = vrcp.f32 %v2141_v33 }
 0xa43   : > { %v2150_v34 = vpop.permute.xlu0 %2149 }
 0xa44   : > { %3080 = vmatpush3.msra.mxu1 %v2150_v34  ;;  %v2542_v34 = vld [vmem:[%s3614_s29 + $0x30] sm:$0xff] }
 0xa45   : > { %3133 = vmatprep.subr.bf16.mxu1 %v3132_v0 }
 0xa4a   : > { %v3258_v25 = vpop.eup %3257 }
 0xa4b   : > { %v3260_v35 = vpop.eup %3259  ;;  %v2142_v36 = vsel %vm719_vm3, %v3258_v25, 0.0 }
 0xa4c   : > { %v2147_v37 = vmul.f32 %v3260_v35, %v3256_v30  ;;  %2143 = vadd.xlane.f32.xlu1 %v2142_v36  ;;  %v2903_v36 = vld [vmem:[%s600_s2] ss:$0 sm:$0xff]  ;;  %s3406_s2 = smov [#allocation7]  }
 0xa4d   : > { %s2676_s25 = sshll.u32 %s3406_s2, 4  ;;  %s2677_s25 = int_to_ptr.vmem [resolvable:$true] %s2676_s25 }
 0xa4e   : > { %3082 = vmatmul.mubr.msk.f32.vlgmr.msra.gmra.mrb[20].mxu1 %vm719_vm3, %v2147_v37  ;;  %s3327_s19 = scalar_lea.vmem %s2677_s25, 256  ;;  %p3334_p12 = scmp.lt.s32.totalorder %s2677_s25, %s2677_s25 }
 0xa4f   : > { %3135 = vmatpush3.bf16.msra.mxu1 %v3132_v0  ;;  %p3328_p9 = scmp.ne.s32.totalorder %s2677_s25, %s3327_s19  ;;  %p3335_p13 = scmp.lt.s32.totalorder %s3327_s19, %s3327_s19 }
 0xa50   : > { %3137 = vmatprep.subr.bf16.mxu1 %v3136_v3 }
 0xa51   : > { %p3336_p0 = por %p3335_p13, %p3334_p12 }
 0xa53   : > { %3139 = vmatpush3.bf16.msra.mxu1 %v3136_v3 }
 0xa5d   : > { %2225 = vrot.lane.b32.xlu1 %v3643_v15, %s3405_s4  ;;  %v2900_v15 = vld [vmem:[%s3922_s20] ss:$0 sm:$0xff] }
 0xad9   : > { %v2144_v14 = vpop.xlane.xlu1 %2143 }
 0xada   : > { %3261 = vrcp.f32 %v2144_v14 }
 0xadd   : > { %v2226_v39 = vpop.permute.xlu1 %2225 }
 0xade   : > { %3085 = vmatpush3.msra.mxu0 %v2226_v39 }
 0xadf   : > { %3089 = vmatprep.subr.mxu0 %v2897_v38 }
 0xae4   : > { %v3262_v40 = vpop.eup %3261 }
 0xae5   : > { %v2148_v41 = vmul.f32 %v3262_v40, %v3258_v25  ;;  %v2543_v25 = vld [vmem:[%s3614_s29 + $0x38] sm:$0xff]  ;;  %s3923_s29 = sadd.s32 4294967295, %s3387_s23  }
 0xae6   : > { %v3152_v35 = vpack.c.bf16 %v2543_v25, %v2542_v34  ;;  %p3850_p4 = scmp.eq.s32.totalorder %s3923_s29, 1 }
 0xae7   : > { %3087 = vmatmul.mubr.msk.f32.vlgmr.msra.gmra.mrb[12].mxu0 %vm719_vm3, %v2148_v41 }
 0xae8   : > { %3090 = vmatpush3.msra.mxu0 %v2897_v38  ;;  %p3329_p10 = pnand %p3328_p9, %p3850_p4 }
 0xae9   : > { %3141 = vmatprep.subr.bf16.mxu0 %v3140_v8 }
 0xaea   : > { %p3330_p11 = pneg %p3329_p10 }
 0xaec   : > { %p3337_p1 = pnand %p3336_p0, %p3330_p11 }
 0xb21   : > { %v2221_v42 = vpop.f32.mrb[20].mxu1 }
 0xb22   : > { %v3083_v43 = vpop.f32.mrb[21].mxu1  ;;  %3091 = vmatprep.mubr.msk.f32.mxu0 %vm719_vm3, %v2221_v42  ;;  %v2906_v42 = vld [vmem:[%s608_s1] ss:$0 sm:$0xff] }
 0xbba   : > { %v2297_v44 = vpop.f32.mrb[12].mxu0 }
 0xbbb   : > { %v3088_v45 = vpop.f32.mrb[13].mxu0  ;;  %3092 = vmatmul.mubr.msk.f32.vlgmr.msra.gmra.mrb[6].mxu0 %vm719_vm3, %v2297_v44 }
 0xbbc   : > { %3143 = vmatpush3.bf16.msra.mxu0 %v3140_v8 }
 0xbbd   : > { %3145 = vmatprep.subr.bf16.mxu0 %v3144_v12 }
 0xbc0   : > { %3147 = vmatpush3.bf16.msra.mxu0 %v3144_v12 }
 0xbc1   : > { %3149 = vmatprep.subr.bf16.mxu0 %v3148_v17 }
 0xbc4   : > { %3151 = vmatpush3.bf16.msra.mxu0 %v3148_v17 }
 0xbc5   : > { %3153 = vmatprep.subr.bf16.mxu0 %v3152_v35 }
 0xbc8   : > { %3155 = vmatpush3.bf16.msra.mxu0 %v3152_v35 }
 0xc8e   : > { %v3093_v46 = vpop.f32.mrb[6].mxu0 }
 0xc8f   : > { %v2394_v47 = vadd.f32 %v3093_v46, %v2900_v15  ;;  %v2375_v48 = vpop.f32.mrb[7].mxu0 }
 0xc90   : > { %v2393_v49 = vadd.f32 %v2900_v15, %v2375_v48 }
 0xc91   : > { %v2398_v50 = vadd.f32 %v2394_v47, %v3625_v9 }
 0xc92   : > { %v2397_v51 = vadd.f32 %v2393_v49, %v3621_v7 }
 0xc93   : > { %v2402_v53 = vsel %vm634_vm1, %v2398_v50, 0.0 }
 0xc94   : > { %2403 = vadd.xlane.f32.xlu0 %v2402_v53  ;;  %v2399_v54 = vsel %vm634_vm1, %v2397_v51, 0.0 }
 0xc95   : > { %2400 = vadd.xlane.f32.xlu1 %v2399_v54 }
 0xd21   : > { %v2404_v55 = vpop.xlane.xlu0 %2403 }
 0xd22   : > { %v2407_v56 = vmul.f32 0.03125, %v2404_v55  ;;  %v2401_v57 = vpop.xlane.xlu1 %2400 }
 0xd23   : > { %v2406_v52 = vmul.f32 0.03125, %v2401_v57 }
 0xd24   : > { %v2409_v58 = vsub.f32 %v2398_v50, %v2407_v56 }
 0xd25   : > { %v2408_v59 = vsub.f32 %v2397_v51, %v2406_v52 }
 0xd26   : > { %v2411_v60 = vmul.f32 %v2409_v58, %v2409_v58 }
 0xd27   : > { %v2410_v9 = vmul.f32 %v2408_v59, %v2408_v59 }
 0xd28   : > { %v2415_v7 = vsel %vm634_vm1, %v2411_v60, 0.0 }
 0xd29   : > { %2416 = vadd.xlane.f32.xlu1 %v2415_v7  ;;  %v2412_v61 = vsel %vm634_vm1, %v2410_v9, 0.0 }
 0xd2a   : > { %2413 = vadd.xlane.f32.xlu0 %v2412_v61 }
 0xdb6   : > { %v2417_v18 = vpop.xlane.xlu1 %2416 }
 0xdb7   : > { %v2419_v19 = vmul.f32 0.03125, %v2417_v18  ;;  %v2414_v21 = vpop.xlane.xlu0 %2413 }
 0xdb8   : > { %v2418_v22 = vmul.f32 0.03125, %v2414_v21 }
 0xdb9   : > { %v2421_v23 = vadd.f32 1e-05, %v2419_v19 }
 0xdba   : > { %v2420_v24 = vadd.f32 1e-05, %v2418_v22 }
 0xdbb   : > { %3263 = vrsqrt.f32 %v2421_v23 }
 0xdbc   : > { %3265 = vrsqrt.f32 %v2420_v24 }
 0xdc5   : > { %v3264_v26 = vpop.eup %3263 }
 0xdc6   : > { %v3266_v28 = vpop.eup %3265  ;;  %v2425_v29 = vmul.f32 %v3264_v26, %v2409_v58 }
 0xdc7   : > { %v2424_v30 = vmul.f32 %v3266_v28, %v2408_v59 }
 0xdc8   : > { %v2433_v20 = vmul.f32 %v3814_v27, %v2425_v29 }
 0xdc9   : > { %v2432_v31 = vmul.f32 %v3814_v27, %v2424_v30 }
 0xdca   : > { %v2441_v33 = vadd.f32 %v3821_v10, %v2433_v20 }
 0xdcb   : > { %v2440_v32 = vadd.f32 %v3821_v10, %v2432_v31 }
 0xdcd   : > { %3102 = vmatprep.mubr.msk.f32.mxu1 %vm634_vm1, %v2440_v32 }
 0xdce   : > { %3103 = vmatmul.mubr.msk.f32.vlgmr.msra.gmra.mrb[22].mxu1 %vm634_vm1, %v2441_v33 }
 0xea1   : > { %v3104_v37 = vpop.f32.mrb[22].mxu1 }
 0xea2   : > { %v2531_v14 = vadd.f32 %v3104_v37, %v2903_v36  ;;  %v2525_v38 = vpop.f32.mrb[23].mxu1 }
 0xea3   : > { %v2526_v39 = vadd.f32 %v2903_v36, %v2525_v38 }
 0xea4   : > { %v2535_v41 = vmax.f32 %v2531_v14, 0.0 }
 0xea5   : > { %v2534_v40 = vmax.f32 %v2526_v39, 0.0 }
 0xea7   : > { %3121 = vmatprep.mubr.msk.f32.mxu0 %vm2551_vm4, %v2534_v40 }
 0xea8   : > { %3122 = vmatmul.mubr.msk.f32.vlgmr.msra.gmra.mrb[14].mxu0 %vm2551_vm4, %v2535_v41 }
 0xf7b   : > { %v3123_v43 = vpop.f32.mrb[14].mxu0 }
 0xf7c   : > { %v2630_v44 = vadd.f32 %v3123_v43, %v2906_v42  ;;  %v2624_v45 = vpop.f32.mrb[15].mxu0 }
 0xf7d   : > { %v2625_v15 = vadd.f32 %v2906_v42, %v2624_v45 }
 0xf7e   : > { %v2634_v46 = vadd.f32 %v2630_v44, %v2441_v33 }
 0xf7f   : > { %v2633_v47 = vadd.f32 %v2625_v15, %v2440_v32 }
 0xf80   : > { %v2638_v48 = vsel %vm634_vm1, %v2634_v46, 0.0 }
 0xf81   : > { %2639 = vadd.xlane.f32.xlu1 %v2638_v48  ;;  %v2635_v49 = vsel %vm634_vm1, %v2633_v47, 0.0 }
 0xf82   : > { %2636 = vadd.xlane.f32.xlu0 %v2635_v49 }
0x100e   : > { %v2640_v50 = vpop.xlane.xlu1 %2639 }
0x100f   : > { %v2642_v51 = vmul.f32 0.03125, %v2640_v50  ;;  %v2637_v53 = vpop.xlane.xlu0 %2636 }
0x1010   : > { %v2641_v54 = vmul.f32 0.03125, %v2637_v53 }
0x1011   : > { %v2644_v55 = vsub.f32 %v2634_v46, %v2642_v51 }
0x1012   : > { %v2643_v56 = vsub.f32 %v2633_v47, %v2641_v54 }
0x1013   : > { %v2646_v57 = vmul.f32 %v2644_v55, %v2644_v55 }
0x1014   : > { %v2645_v52 = vmul.f32 %v2643_v56, %v2643_v56 }
0x1015   : > { %v2650_v58 = vsel %vm634_vm1, %v2646_v57, 0.0 }
0x1016   : > { %2651 = vadd.xlane.f32.xlu1 %v2650_v58  ;;  %v2647_v59 = vsel %vm634_vm1, %v2645_v52, 0.0 }
0x1017   : > { %2648 = vadd.xlane.f32.xlu0 %v2647_v59 }
0x10a3   : > { %v2652_v60 = vpop.xlane.xlu1 %2651 }
0x10a4   : > { %v2654_v9 = vmul.f32 0.03125, %v2652_v60  ;;  %v2649_v7 = vpop.xlane.xlu0 %2648 }
0x10a5   : > { %v2653_v61 = vmul.f32 0.03125, %v2649_v7 }
0x10a6   : > { %v2656_v62 = vadd.f32 1e-05, %v2654_v9 }
0x10a7   : > { %v2655_v63 = vadd.f32 1e-05, %v2653_v61 }
0x10a8   : > { %3267 = vrsqrt.f32 %v2656_v62 }
0x10a9   : > { %3269 = vrsqrt.f32 %v2655_v63 }
0x10b2   : > { %v3268_v0 = vpop.eup %3267 }
0x10b3   : > { %v3270_v1 = vpop.eup %3269  ;;  %v2660_v2 = vmul.f32 %v3268_v0, %v2644_v55 }
0x10b4   : > { %v2659_v3 = vmul.f32 %v3270_v1, %v2643_v56 }
0x10b5   : > { %v2662_v4 = vmul.f32 %v3814_v27, %v2660_v2 }
0x10b6   : > { %v2661_v5 = vmul.f32 %v3814_v27, %v2659_v3 }
0x10b7   : > { %v2664_v6 = vadd.f32 %v3821_v10, %v2662_v4 }
0x10b8   : > { %v2663_v8 = vadd.f32 %v3821_v10, %v2661_v5 }
0x10b9   : > { %2666 = vst.msk [vmem:[#allocation7 + $0x8] sm:$0xff] %vm634_vm1, %v2664_v6 }
0x10ba   : > { %2665 = vst.msk [vmem:[#allocation7] sm:$0xff] %vm634_vm1, %v2663_v8 }
0x10bb   : > { %3340 = shalt.err (!%p3337_p1)
}
0x10bc   : > { %s3341_s22 = scalar_lea.hbm %s3900_s12, 256 }
0x10bd   : > { %p3342_p2 = scmp.ne.s32.totalorder %s3900_s12, %s3341_s22  ;;  %p3347_p3 = scmp.lt.u32.totalorder %s3341_s22, %s3900_s12 }
0x10bf   : > { %p3343_p5 = pnand %p3342_p2, %p3850_p4 }
0x10c1   : > { %p3344_p7 = pneg %p3343_p5 }
0x10c3   : > { %p3349_p8 = pnand %p3347_p3, %p3344_p7 }
0x10c5   : > { %3352 = shalt.err (!%p3349_p8)
}
0x10c6   : > { %s3407_s20 = smov 128   ;;  %s3408_s16 = smov 8  }
0x10c7   : > { %3171 = dma.vmem_to_hbm [thread:$0]  (%p3850_p4), %s2677_s25, 256, %s3900_s12, [#allocation4], %s3407_s20, %s3407_s20, %s3408_s16  }
0x10c8   : > { %3374 = dma.done.wait (%p3850_p4), [#allocation4], 256  }
0x10c9   : > { %3376 = vsyncadd (%p3850_p4), [#allocation4], 4294967040 }
0x10ca PF: > { %s25_s23 = sadd.s32 1, %s3387_s23   ;;  %s3925_s21 = sld [smem:[#allocation11_spill]] }
0x10cb   : > { %p22_p6 = scmp.ge.s32.totalorder %s25_s23, 4   ;;  %s3926_s22 = sld [smem:[#allocation12_spill]] }
0x10cd   :  { %24 = sbr.rel (!%p22_p6) target bundleno = 9 (0x9), region = 141 }
0x10d4   :  { %2692 = vsyncpa [#allocation3], 1 }
0x10d5   :  { %2694 = vsyncpa [#allocation3 + $0x1], 1 }
0x10d6   :  { %2695 = vsyncpa [#allocation6], 1 }
0x10d7   :  { %2696 = vsyncpa [#allocation4], 1 }
0x10d8   :  { %2698 = vsyncpa [#allocation4 + $0x1], 1 }

</bundles_post_ra>
